<compile_context>
chip_gen: v7x
topology: tpu7x:2x2x1
jax: 0.10.0
libtpu: 0.0.40
codegen_flags: <defaults>
</compile_context>

<pallas_src>
import jax
import jax.numpy as jnp
from jax.experimental import pallas as pl
from jax.experimental.pallas import tpu as pltpu


# ------------------------------ kernel --------------------------------------
def _make_decoder_kernel(kappa, n_layer, cheby_k, has_graph, matmul_dtype):
    kappa = float(kappa)
    # kappa == 1.0 -> aggregation is identity -> weights presummed wrapper-side
    k_eff = cheby_k if has_graph else 1

    def kernel(*refs):
        idx = 0
        x_ref = refs[idx]; idx += 1
        g_ref = None
        if has_graph:
            g_ref = refs[idx]; idx += 1
        layer_refs = refs[idx: idx + 5 * n_layer]
        out_ref = refs[idx + 5 * n_layer]

        gmat = g_ref[...] if has_graph else None   # (R, R) f32 block-diag G^T

        def mm(a, b):
            return jnp.dot(a, b, preferred_element_type=jnp.float32)

        def cheb_aggs(v):
            # mixhop aggregations [agg_0 .. agg_{k_eff-1}] of v (batch folded
            # block-diagonally into rows):
            #   agg_k = kappa * v + (1 - kappa) * T_k(G^T) v
            # computed with the three-term Chebyshev recurrence so only G^T
            # (one matrix) lives in VMEM.  k == 0 is the identity term
            # (no matmul); kappa == 1.0 has k_eff == 1 -> no graph matmuls.
            res = [v]
            if k_eff > 1:
                t_prev, t_cur = v, mm(gmat, v)
                res.append(kappa * v + (1.0 - kappa) * t_cur)
                for _ in range(2, k_eff):
                    t_prev, t_cur = t_cur, 2.0 * mm(gmat, t_cur) - t_prev
                    res.append(kappa * v + (1.0 - kappa) * t_cur)
            return res

        x = x_ref[...].astype(jnp.float32)           # (R, Din_0)
        h_news = []
        for l in range(n_layer):
            h_ref, wg_ref, wc_ref, bg_ref, bc_ref = layer_refs[5 * l: 5 * l + 5]
            h = h_ref[...].astype(jnp.float32)       # (R, H)
            H = h.shape[-1]

            xa = cheb_aggs(x)        # x-path aggs: computed once, reused 2x
            ha = cheb_aggs(h)

            # gates: ONE fused (R, K*(Din+H)) @ (K*(Din+H), 2H) matmul
            gate_in = jnp.concatenate(
                [t for k in range(k_eff) for t in (xa[k], ha[k])], axis=-1)
            ur = mm(gate_in.astype(matmul_dtype), wg_ref[...]) + bg_ref[...]
            update = jax.nn.sigmoid(ur[:, :H])       # in-register lane slice
            reset = jax.nn.sigmoid(ur[:, H:])

            # candidate: ONE fused matmul, reusing the x-path aggregations
            rha = cheb_aggs(reset * h)
            cand_in = jnp.concatenate(
                [t for k in range(k_eff) for t in (xa[k], rha[k])], axis=-1)
            c = jnp.tanh(mm(cand_in.astype(matmul_dtype), wc_ref[...])
                         + bc_ref[...])

            h_new = (1.0 - update) * h + update * c
            h_news.append(h_new)
            x = h_new                 # feed next layer; never leaves VMEM/vregs

        packed = h_news[0] if n_layer == 1 else jnp.concatenate(h_news, axis=-1)
        out_ref[...] = packed.astype(out_ref.dtype)   # single lane-dense store

    return kernel


# ------------------------------ wrapper --------------------------------------
def _auto_matmul_dtype():
    # bf16 MXU operands (f32 accumulate, f32 elementwise) on v6e/v7x; f32 else.
    try:
        kind = jax.devices()[0].device_kind.lower()
    except Exception:
        return jnp.float32
    return jnp.bfloat16 if ("v6" in kind or "v7" in kind) else jnp.float32


def _pick_batch_block(B, N, target_rows=128):
    # Largest divisor of B whose row count BB*N does not exceed ~target_rows
    # (fills the MXU row dimension; grid then iterates batch blocks).
    want = max(1, target_rows // max(N, 1))
    bb = 1
    for d in range(1, B + 1):
        if B % d == 0 and d <= want:
            bb = d
    return bb


def gcrn_decoder_pallas(xt, G, ht, params, cheby_k, kappa,
                        matmul_dtype=None, target_rows=128):
    """GCRN_Decoder.forward.

    xt     : (B, N, h_in)
    G      : (N, N)
    ht     : list of n_layer hidden states, each (B, N, H_l)
    params : list of (wg (K, Din_l+H, 2H), bg (1, 2H), wc (K, Din_l+H, H), bc (1, H))
    returns (ht_last, ht_list) like the PyTorch module (f32).
    """
    B, N, din0 = xt.shape
    n_layer = len(params)
    kappa = float(kappa)
    has_graph = (kappa != 1.0)
    if matmul_dtype is None:
        matmul_dtype = _auto_matmul_dtype()

    h_dims = [wc.shape[-1] for (_, _, wc, _) in params]
    sum_h = int(sum(h_dims))

    bb = _pick_batch_block(B, N, target_rows)
    R = bb * N
    grid = (B // bb,)

    # ---- flatten batch into the sublane (row) dimension wrapper-side -------
    inputs = [(xt.reshape(B * N, din0), False)]           # (array, invariant?)
    if has_graph:
        # kappa != 1.0 only: batch-block-diagonal G^T, kept in f32 (accuracy
        # of the length-N adjacency sums; the dense projections use
        # matmul_dtype).
        gmat = jnp.kron(jnp.eye(bb, dtype=jnp.float32), G.T.astype(jnp.float32))
        inputs.append((gmat, True))

    din = din0
    for (wg, bg, wc, bc), h0 in zip(params, ht):
        H = wc.shape[-1]
        P = din + H
        assert wg.shape == (cheby_k, P, 2 * H) and wc.shape == (cheby_k, P, H)
        if has_graph:
            wg_f = wg.reshape(cheby_k * P, 2 * H)   # fused K + x/h + update/reset
            wc_f = wc.reshape(cheby_k * P, H)
        else:
            wg_f = wg.sum(axis=0)                   # exact when kappa == 1.0
            wc_f = wc.sum(axis=0)
        inputs.append((h0.reshape(B * N, H), False))
        inputs.append((wg_f.astype(matmul_dtype), True))   # pre-cast constants
        inputs.append((wc_f.astype(matmul_dtype), True))
        inputs.append((bg.reshape(1, 2 * H).astype(jnp.float32), True))
        inputs.append((bc.reshape(1, H).astype(jnp.float32), True))
        din = H

    out_shape = jax.ShapeDtypeStruct((B * N, sum_h), jnp.float32)
    kernel = _make_decoder_kernel(kappa, n_layer, cheby_k, has_graph,
                                  matmul_dtype)

    def batched_spec(arr):
        return pl.BlockSpec((R, arr.shape[1]), lambda i: (i, 0))

    def invariant_spec(arr, single_buffer):
        nd = arr.ndim
        if single_buffer:
            # grid-invariant: single-buffer to halve its VMEM reservation
            return pl.BlockSpec(arr.shape, lambda i, _nd=nd: (0,) * _nd,
                                pipeline_mode=pl.Buffered(1))
        return pl.BlockSpec(arr.shape, lambda i, _nd=nd: (0,) * _nd)

    def vmem_limit():
        total = 0
        for a, inv in inputs:
            blk = (a.size if inv else R * a.shape[1]) * a.dtype.itemsize
            total += 2 * blk                      # assume double-buffered
        total += 2 * R * sum_h * 4                # output block
        return int(min(64 * 2 ** 20, max(4 * 2 ** 20, 4 * total)))

    def launch(single_buffer_invariants):
        in_specs = [invariant_spec(a, single_buffer_invariants) if inv
                    else batched_spec(a) for a, inv in inputs]
        return pl.pallas_call(
            kernel,
            out_shape=out_shape,
            grid_spec=pltpu.PrefetchScalarGridSpec(
                num_scalar_prefetch=0,
                grid=grid,
                in_specs=in_specs,
                out_specs=pl.BlockSpec((R, sum_h), lambda i: (i, 0)),
            ),
            compiler_params=pltpu.CompilerParams(
                dimension_semantics=("parallel",),
                vmem_limit_bytes=vmem_limit()),
        )(*[a for a, _ in inputs])

    try:
        packed = launch(True)
    except Exception:
        # installed JAX rejects pipeline_mode / Buffered(1): fall back to the
        # default double-buffered specs (correctness identical).
        packed = launch(False)

    packed = packed.reshape(B, N, sum_h)
    outs, off = [], 0
    for H in h_dims:
        outs.append(packed[..., off:off + H])
        off += H
    return outs[-1], outs


def init_decoder_params(key, h_in, h_dims, cheby_k):
    params = []
    for l, H in enumerate(h_dims):
        din = h_in if l == 0 else h_dims[l - 1]
        P = din + H
        key, k1, k2, k3, k4 = jax.random.split(key, 5)
        scale = 1.0 / jnp.sqrt(float(P * cheby_k))
        wg = jax.random.normal(k1, (cheby_k, P, 2 * H), jnp.float32) * scale
        bg = jax.random.normal(k2, (1, 2 * H), jnp.float32) * 0.01
        wc = jax.random.normal(k3, (cheby_k, P, H), jnp.float32) * scale
        bc = jax.random.normal(k4, (1, H), jnp.float32) * 0.01
        params.append((wg, bg, wc, bc))
    return params


# ---------------- pure-JAX reference for correctness check -------------------
def chebyshev_set_T(G, cheby_k):
    """[I, G, 2 G G_{k-1} - G_{k-2}, ...][:cheby_k], pre-transposed: (K, N, N)."""
    n = G.shape[0]
    gs = [jnp.eye(n, dtype=G.dtype), G]
    for _ in range(2, cheby_k):
        gs.append(2.0 * (G @ gs[-1]) - gs[-2])
    gs = gs[:cheby_k]
    return jnp.stack([g.T for g in gs], axis=0)


def gcrn_decoder_ref(xt, G, ht, params, cheby_k, kappa):
    gt = chebyshev_set_T(G, cheby_k)

    def mixhop(x, w, b):
        out = jnp.zeros(x.shape[:2] + (w.shape[-1],), jnp.float32) + b
        for k in range(cheby_k):
            agg = kappa * x + (1.0 - kappa) * jnp.einsum('mn,bnp->bmp', gt[k], x)
            out = out + jnp.einsum('bnp,po->bno', agg, w[k])
        return out

    x = xt
    new_ht = []
    for (wg, bg, wc, bc), h in zip(params, ht):
        H = wc.shape[-1]
        u_r = mixhop(jnp.concatenate([x, h], -1), wg, bg)
        update = jax.nn.sigmoid(u_r[..., :H])
        reset = jax.nn.sigmoid(u_r[..., H:])
        c = jnp.tanh(mixhop(jnp.concatenate([x, reset * h], -1), wc, bc))
        h_new = (1.0 - update) * h + update * c
        new_ht.append(h_new)
        x = h_new
    return new_ht[-1], new_ht


if __name__ == "__main__":
    B, N = 2, 16
    h_in, h_out, cheby_k, n_layer = 4, 32, 3, 2
    h_dims = [h_out] * n_layer

    key = jax.random.PRNGKey(0)
    kx, kg, kh, kp = jax.random.split(key, 4)
    xt = jax.random.normal(kx, (B, N, h_in), jnp.float32)
    G = jax.random.uniform(kg, (N, N), jnp.float32) / N
    hkeys = jax.random.split(kh, n_layer)
    ht = [jax.random.normal(hkeys[l], (B, N, h_dims[l]), jnp.float32) * 0.5
          for l in range(n_layer)]
    params = init_decoder_params(kp, h_in, h_dims, cheby_k)

    # kappa = 1.0 reproduces the module exactly (use_bias lands positionally in
    # GCRU_Cell's kappa); kappa = 0.05 additionally exercises the in-kernel
    # Chebyshev graph-aggregation path.
    for kappa in (1.0, 0.05):
        ht_last, ht_new = gcrn_decoder_pallas(xt, G, ht, params, cheby_k, kappa,
                                              matmul_dtype=jnp.float32)
        jax.block_until_ready(ht_new)
        ref_last, ref_new = gcrn_decoder_ref(xt, G, ht, params, cheby_k, kappa)
        for got, ref in zip([ht_last] + ht_new, [ref_last] + ref_new):
            assert got.shape == ref.shape
            err = float(jnp.max(jnp.abs(got - ref)))
            assert jnp.allclose(got, ref, atol=1e-4, rtol=1e-4), (
                "kappa=%s max abs err=%e" % (kappa, err))

    # bf16 MXU-operand path (auto-default on v6e/v7x): f32 accumulate + f32
    # elementwise, so only matmul rounding differs -> looser tolerance.
    ht_last, ht_new = gcrn_decoder_pallas(xt, G, ht, params, cheby_k, 0.05,
                                          matmul_dtype=jnp.bfloat16)
    jax.block_until_ready(ht_new)
    ref_last, ref_new = gcrn_decoder_ref(xt, G, ht, params, cheby_k, 0.05)
    for got, ref in zip([ht_last] + ht_new, [ref_last] + ref_new):
        err = float(jnp.max(jnp.abs(got - ref)))
        assert jnp.allclose(got, ref, atol=5e-2, rtol=5e-2), (
            "bf16 max abs err=%e" % err)

    print("KERNEL_OK")
</pallas_src>

<mosaic_0001>
module attributes {stable_mosaic.version = 11 : i64} {
  func.func @kernel(%arg0: i32, %arg1: memref<32x4xf32, #tpu.memory_space<vmem>>, %arg2: memref<32x32xf32, #tpu.memory_space<vmem>>, %arg3: memref<36x64xf32, #tpu.memory_space<vmem>>, %arg4: memref<36x32xf32, #tpu.memory_space<vmem>>, %arg5: memref<1x64xf32, #tpu.memory_space<vmem>>, %arg6: memref<1x32xf32, #tpu.memory_space<vmem>>, %arg7: memref<32x32xf32, #tpu.memory_space<vmem>>, %arg8: memref<64x64xf32, #tpu.memory_space<vmem>>, %arg9: memref<64x32xf32, #tpu.memory_space<vmem>>, %arg10: memref<1x64xf32, #tpu.memory_space<vmem>>, %arg11: memref<1x32xf32, #tpu.memory_space<vmem>>, %arg12: memref<32x64xf32, #tpu.memory_space<vmem>>) attributes {dimension_semantics = [#tpu.dimension_semantics<parallel>], iteration_bounds = array<i64: 1>, scalar_prefetch = 0 : i64, scratch_operands = 0 : i64, tpu.core_type = #tpu.core_type<tc>, window_params = [{transform_indices = @transform_0, window_bounds = array<i64: 32, 4>}, {transform_indices = @transform_1, window_bounds = array<i64: 32, 32>}, {pipeline_mode = #tpu.pipeline_mode<synchronous>, transform_indices = @transform_2, window_bounds = array<i64: 36, 64>}, {pipeline_mode = #tpu.pipeline_mode<synchronous>, transform_indices = @transform_3, window_bounds = array<i64: 36, 32>}, {pipeline_mode = #tpu.pipeline_mode<synchronous>, transform_indices = @transform_4, window_bounds = array<i64: 1, 64>}, {pipeline_mode = #tpu.pipeline_mode<synchronous>, transform_indices = @transform_5, window_bounds = array<i64: 1, 32>}, {transform_indices = @transform_6, window_bounds = array<i64: 32, 32>}, {pipeline_mode = #tpu.pipeline_mode<synchronous>, transform_indices = @transform_7, window_bounds = array<i64: 64, 64>}, {pipeline_mode = #tpu.pipeline_mode<synchronous>, transform_indices = @transform_8, window_bounds = array<i64: 64, 32>}, {pipeline_mode = #tpu.pipeline_mode<synchronous>, transform_indices = @transform_9, window_bounds = array<i64: 1, 64>}, {pipeline_mode = #tpu.pipeline_mode<synchronous>, transform_indices = @transform_10, window_bounds = array<i64: 1, 32>}, {transform_indices = @transform_11, window_bounds = array<i64: 32, 64>}]} {
    %c0 = arith.constant 0 : index
    %c0_0 = arith.constant 0 : index
    %0 = vector.load %arg1[%c0, %c0_0] : memref<32x4xf32, #tpu.memory_space<vmem>>, vector<32x4xf32>
    %c0_1 = arith.constant 0 : index
    %c0_2 = arith.constant 0 : index
    %1 = vector.load %arg2[%c0_1, %c0_2] : memref<32x32xf32, #tpu.memory_space<vmem>>, vector<32x32xf32>
    %2 = tpu.concatenate %0, %1 in 1 : vector<32x4xf32>, vector<32x32xf32> -> vector<32x36xf32>
    %c0_3 = arith.constant 0 : index
    %c0_4 = arith.constant 0 : index
    %3 = vector.load %arg3[%c0_3, %c0_4] : memref<36x64xf32, #tpu.memory_space<vmem>>, vector<36x64xf32>
    %cst = arith.constant dense<0.000000e+00> : vector<32x64xf32>
    %4 = tpu.matmul %2, %3, %cst {dimension_numbers = #tpu.dot_dimension_numbers<[1], [0], [0], [1], [0, 0, 1, 1], [], []>} : vector<32x36xf32>, vector<36x64xf32>, vector<32x64xf32> -> vector<32x64xf32>
    %c0_5 = arith.constant 0 : index
    %c0_6 = arith.constant 0 : index
    %5 = vector.load %arg5[%c0_5, %c0_6] : memref<1x64xf32, #tpu.memory_space<vmem>>, vector<1x64xf32>
    %6 = vector.broadcast %5 : vector<1x64xf32> to vector<32x64xf32>
    %7 = arith.addf %4, %6 : vector<32x64xf32>
    %8 = vector.extract_strided_slice %7 {offsets = [0, 0], sizes = [32, 32], strides = [1, 1]} : vector<32x64xf32> to vector<32x32xf32>
    %9 = arith.negf %8 : vector<32x32xf32>
    %10 = math.exp %9 : vector<32x32xf32>
    %cst_7 = arith.constant 1.000000e+00 : f32
    %11 = vector.broadcast %cst_7 : f32 to vector<32x32xf32>
    %12 = arith.addf %11, %10 : vector<32x32xf32>
    %13 = arith.divf %11, %12 : vector<32x32xf32>
    %14 = vector.extract_strided_slice %7 {offsets = [0, 32], sizes = [32, 32], strides = [1, 1]} : vector<32x64xf32> to vector<32x32xf32>
    %15 = arith.negf %14 : vector<32x32xf32>
    %16 = math.exp %15 : vector<32x32xf32>
    %cst_8 = arith.constant 1.000000e+00 : f32
    %17 = vector.broadcast %cst_8 : f32 to vector<32x32xf32>
    %18 = arith.addf %17, %16 : vector<32x32xf32>
    %19 = arith.divf %17, %18 : vector<32x32xf32>
    %20 = arith.mulf %19, %1 : vector<32x32xf32>
    %21 = tpu.concatenate %0, %20 in 1 : vector<32x4xf32>, vector<32x32xf32> -> vector<32x36xf32>
    %c0_9 = arith.constant 0 : index
    %c0_10 = arith.constant 0 : index
    %22 = vector.load %arg4[%c0_9, %c0_10] : memref<36x32xf32, #tpu.memory_space<vmem>>, vector<36x32xf32>
    %cst_11 = arith.constant dense<0.000000e+00> : vector<32x32xf32>
    %23 = tpu.matmul %21, %22, %cst_11 {dimension_numbers = #tpu.dot_dimension_numbers<[1], [0], [0], [1], [0, 0, 1, 1], [], []>} : vector<32x36xf32>, vector<36x32xf32>, vector<32x32xf32> -> vector<32x32xf32>
    %c0_12 = arith.constant 0 : index
    %c0_13 = arith.constant 0 : index
    %24 = vector.load %arg6[%c0_12, %c0_13] : memref<1x32xf32, #tpu.memory_space<vmem>>, vector<1x32xf32>
    %25 = vector.broadcast %24 : vector<1x32xf32> to vector<32x32xf32>
    %26 = arith.addf %23, %25 : vector<32x32xf32>
    %27 = math.tanh %26 : vector<32x32xf32>
    %cst_14 = arith.constant 1.000000e+00 : f32
    %28 = vector.broadcast %cst_14 : f32 to vector<32x32xf32>
    %29 = arith.subf %28, %13 : vector<32x32xf32>
    %30 = arith.mulf %29, %1 : vector<32x32xf32>
    %31 = arith.mulf %13, %27 : vector<32x32xf32>
    %32 = arith.addf %30, %31 : vector<32x32xf32>
    %c0_15 = arith.constant 0 : index
    %c0_16 = arith.constant 0 : index
    %33 = vector.load %arg7[%c0_15, %c0_16] : memref<32x32xf32, #tpu.memory_space<vmem>>, vector<32x32xf32>
    %34 = tpu.concatenate %32, %33 in 1 : vector<32x32xf32>, vector<32x32xf32> -> vector<32x64xf32>
    %c0_17 = arith.constant 0 : index
    %c0_18 = arith.constant 0 : index
    %35 = vector.load %arg8[%c0_17, %c0_18] : memref<64x64xf32, #tpu.memory_space<vmem>>, vector<64x64xf32>
    %cst_19 = arith.constant dense<0.000000e+00> : vector<32x64xf32>
    %36 = tpu.matmul %34, %35, %cst_19 {dimension_numbers = #tpu.dot_dimension_numbers<[1], [0], [0], [1], [0, 0, 1, 1], [], []>} : vector<32x64xf32>, vector<64x64xf32>, vector<32x64xf32> -> vector<32x64xf32>
    %c0_20 = arith.constant 0 : index
    %c0_21 = arith.constant 0 : index
    %37 = vector.load %arg10[%c0_20, %c0_21] : memref<1x64xf32, #tpu.memory_space<vmem>>, vector<1x64xf32>
    %38 = vector.broadcast %37 : vector<1x64xf32> to vector<32x64xf32>
    %39 = arith.addf %36, %38 : vector<32x64xf32>
    %40 = vector.extract_strided_slice %39 {offsets = [0, 0], sizes = [32, 32], strides = [1, 1]} : vector<32x64xf32> to vector<32x32xf32>
    %41 = arith.negf %40 : vector<32x32xf32>
    %42 = math.exp %41 : vector<32x32xf32>
    %cst_22 = arith.constant 1.000000e+00 : f32
    %43 = vector.broadcast %cst_22 : f32 to vector<32x32xf32>
    %44 = arith.addf %43, %42 : vector<32x32xf32>
    %45 = arith.divf %43, %44 : vector<32x32xf32>
    %46 = vector.extract_strided_slice %39 {offsets = [0, 32], sizes = [32, 32], strides = [1, 1]} : vector<32x64xf32> to vector<32x32xf32>
    %47 = arith.negf %46 : vector<32x32xf32>
    %48 = math.exp %47 : vector<32x32xf32>
    %cst_23 = arith.constant 1.000000e+00 : f32
    %49 = vector.broadcast %cst_23 : f32 to vector<32x32xf32>
    %50 = arith.addf %49, %48 : vector<32x32xf32>
    %51 = arith.divf %49, %50 : vector<32x32xf32>
    %52 = arith.mulf %51, %33 : vector<32x32xf32>
    %53 = tpu.concatenate %32, %52 in 1 : vector<32x32xf32>, vector<32x32xf32> -> vector<32x64xf32>
    %c0_24 = arith.constant 0 : index
    %c0_25 = arith.constant 0 : index
    %54 = vector.load %arg9[%c0_24, %c0_25] : memref<64x32xf32, #tpu.memory_space<vmem>>, vector<64x32xf32>
    %cst_26 = arith.constant dense<0.000000e+00> : vector<32x32xf32>
    %55 = tpu.matmul %53, %54, %cst_26 {dimension_numbers = #tpu.dot_dimension_numbers<[1], [0], [0], [1], [0, 0, 1, 1], [], []>} : vector<32x64xf32>, vector<64x32xf32>, vector<32x32xf32> -> vector<32x32xf32>
    %c0_27 = arith.constant 0 : index
    %c0_28 = arith.constant 0 : index
    %56 = vector.load %arg11[%c0_27, %c0_28] : memref<1x32xf32, #tpu.memory_space<vmem>>, vector<1x32xf32>
    %57 = vector.broadcast %56 : vector<1x32xf32> to vector<32x32xf32>
    %58 = arith.addf %55, %57 : vector<32x32xf32>
    %59 = math.tanh %58 : vector<32x32xf32>
    %cst_29 = arith.constant 1.000000e+00 : f32
    %60 = vector.broadcast %cst_29 : f32 to vector<32x32xf32>
    %61 = arith.subf %60, %45 : vector<32x32xf32>
    %62 = arith.mulf %61, %33 : vector<32x32xf32>
    %63 = arith.mulf %45, %59 : vector<32x32xf32>
    %64 = arith.addf %62, %63 : vector<32x32xf32>
    %65 = tpu.concatenate %32, %64 in 1 : vector<32x32xf32>, vector<32x32xf32> -> vector<32x64xf32>
    %c0_30 = arith.constant 0 : index
    %c0_31 = arith.constant 0 : index
    %66 = vector.load %arg12[%c0_30, %c0_31] : memref<32x64xf32, #tpu.memory_space<vmem>>, vector<32x64xf32>
    tpu.vector_store %arg12[%c0_30, %c0_31], %65 {strides = array<i32>} : memref<32x64xf32, #tpu.memory_space<vmem>>, vector<32x64xf32>,
    return
  }
  func.func @transform_0(%arg0: i32) -> (i32, i32) {
    %c0_i32 = arith.constant 0 : i32
    %c0_i32_0 = arith.constant 0 : i32
    return %arg0, %c0_i32 : i32, i32
  }
  func.func @transform_1(%arg0: i32) -> (i32, i32) {
    %c0_i32 = arith.constant 0 : i32
    %c0_i32_0 = arith.constant 0 : i32
    return %arg0, %c0_i32 : i32, i32
  }
  func.func @transform_2(%arg0: i32) -> (i32, i32) {
    %c0_i32 = arith.constant 0 : i32
    %c0_i32_0 = arith.constant 0 : i32
    %c0_i32_1 = arith.constant 0 : i32
    return %c0_i32, %c0_i32_0 : i32, i32
  }
  func.func @transform_3(%arg0: i32) -> (i32, i32) {
    %c0_i32 = arith.constant 0 : i32
    %c0_i32_0 = arith.constant 0 : i32
    %c0_i32_1 = arith.constant 0 : i32
    return %c0_i32, %c0_i32_0 : i32, i32
  }
  func.func @transform_4(%arg0: i32) -> (i32, i32) {
    %c0_i32 = arith.constant 0 : i32
    %c0_i32_0 = arith.constant 0 : i32
    %c0_i32_1 = arith.constant 0 : i32
    return %c0_i32, %c0_i32_0 : i32, i32
  }
  func.func @transform_5(%arg0: i32) -> (i32, i32) {
    %c0_i32 = arith.constant 0 : i32
    %c0_i32_0 = arith.constant 0 : i32
    %c0_i32_1 = arith.constant 0 : i32
    return %c0_i32, %c0_i32_0 : i32, i32
  }
  func.func @transform_6(%arg0: i32) -> (i32, i32) {
    %c0_i32 = arith.constant 0 : i32
    %c0_i32_0 = arith.constant 0 : i32
    return %arg0, %c0_i32 : i32, i32
  }
  func.func @transform_7(%arg0: i32) -> (i32, i32) {
    %c0_i32 = arith.constant 0 : i32
    %c0_i32_0 = arith.constant 0 : i32
    %c0_i32_1 = arith.constant 0 : i32
    return %c0_i32, %c0_i32_0 : i32, i32
  }
  func.func @transform_8(%arg0: i32) -> (i32, i32) {
    %c0_i32 = arith.constant 0 : i32
    %c0_i32_0 = arith.constant 0 : i32
    %c0_i32_1 = arith.constant 0 : i32
    return %c0_i32, %c0_i32_0 : i32, i32
  }
  func.func @transform_9(%arg0: i32) -> (i32, i32) {
    %c0_i32 = arith.constant 0 : i32
    %c0_i32_0 = arith.constant 0 : i32
    %c0_i32_1 = arith.constant 0 : i32
    return %c0_i32, %c0_i32_0 : i32, i32
  }
  func.func @transform_10(%arg0: i32) -> (i32, i32) {
    %c0_i32 = arith.constant 0 : i32
    %c0_i32_0 = arith.constant 0 : i32
    %c0_i32_1 = arith.constant 0 : i32
    return %c0_i32, %c0_i32_0 : i32, i32
  }
  func.func @transform_11(%arg0: i32) -> (i32, i32) {
    %c0_i32 = arith.constant 0 : i32
    %c0_i32_0 = arith.constant 0 : i32
    return %arg0, %c0_i32 : i32, i32
  }
}

module attributes {stable_mosaic.version = 11 : i64} {
  func.func @kernel(%arg0: i32, %arg1: memref<32x4xf32, #tpu.memory_space<vmem>>, %arg2: memref<32x32xf32, #tpu.memory_space<vmem>>, %arg3: memref<36x64xf32, #tpu.memory_space<vmem>>, %arg4: memref<36x32xf32, #tpu.memory_space<vmem>>, %arg5: memref<1x64xf32, #tpu.memory_space<vmem>>, %arg6: memref<1x32xf32, #tpu.memory_space<vmem>>, %arg7: memref<32x32xf32, #tpu.memory_space<vmem>>, %arg8: memref<64x64xf32, #tpu.memory_space<vmem>>, %arg9: memref<64x32xf32, #tpu.memory_space<vmem>>, %arg10: memref<1x64xf32, #tpu.memory_space<vmem>>, %arg11: memref<1x32xf32, #tpu.memory_space<vmem>>, %arg12: memref<32x64xf32, #tpu.memory_space<vmem>>) attributes {dimension_semantics = [#tpu.dimension_semantics<parallel>], iteration_bounds = array<i64: 1>, scalar_prefetch = 0 : i64, scratch_operands = 0 : i64, tpu.core_type = #tpu.core_type<tc>, window_params = [{transform_indices = @transform_0, window_bounds = array<i64: 32, 4>}, {transform_indices = @transform_1, window_bounds = array<i64: 32, 32>}, {pipeline_mode = #tpu.pipeline_mode<synchronous>, transform_indices = @transform_2, window_bounds = array<i64: 36, 64>}, {pipeline_mode = #tpu.pipeline_mode<synchronous>, transform_indices = @transform_3, window_bounds = array<i64: 36, 32>}, {pipeline_mode = #tpu.pipeline_mode<synchronous>, transform_indices = @transform_4, window_bounds = array<i64: 1, 64>}, {pipeline_mode = #tpu.pipeline_mode<synchronous>, transform_indices = @transform_5, window_bounds = array<i64: 1, 32>}, {transform_indices = @transform_6, window_bounds = array<i64: 32, 32>}, {pipeline_mode = #tpu.pipeline_mode<synchronous>, transform_indices = @transform_7, window_bounds = array<i64: 64, 64>}, {pipeline_mode = #tpu.pipeline_mode<synchronous>, transform_indices = @transform_8, window_bounds = array<i64: 64, 32>}, {pipeline_mode = #tpu.pipeline_mode<synchronous>, transform_indices = @transform_9, window_bounds = array<i64: 1, 64>}, {pipeline_mode = #tpu.pipeline_mode<synchronous>, transform_indices = @transform_10, window_bounds = array<i64: 1, 32>}, {transform_indices = @transform_11, window_bounds = array<i64: 32, 64>}]} {
    %c0 = arith.constant 0 : index
    %c0_0 = arith.constant 0 : index
    %0 = vector.load %arg1[%c0, %c0_0] : memref<32x4xf32, #tpu.memory_space<vmem>>, vector<32x4xf32>
    %c0_1 = arith.constant 0 : index
    %c0_2 = arith.constant 0 : index
    %1 = vector.load %arg2[%c0_1, %c0_2] : memref<32x32xf32, #tpu.memory_space<vmem>>, vector<32x32xf32>
    %2 = tpu.concatenate %0, %1 in 1 : vector<32x4xf32>, vector<32x32xf32> -> vector<32x36xf32>
    %c0_3 = arith.constant 0 : index
    %c0_4 = arith.constant 0 : index
    %3 = vector.load %arg3[%c0_3, %c0_4] : memref<36x64xf32, #tpu.memory_space<vmem>>, vector<36x64xf32>
    %cst = arith.constant dense<0.000000e+00> : vector<32x64xf32>
    %4 = tpu.matmul %2, %3, %cst {dimension_numbers = #tpu.dot_dimension_numbers<[1], [0], [0], [1], [0, 0, 1, 1], [], []>} : vector<32x36xf32>, vector<36x64xf32>, vector<32x64xf32> -> vector<32x64xf32>
    %c0_5 = arith.constant 0 : index
    %c0_6 = arith.constant 0 : index
    %5 = vector.load %arg5[%c0_5, %c0_6] : memref<1x64xf32, #tpu.memory_space<vmem>>, vector<1x64xf32>
    %6 = vector.broadcast %5 : vector<1x64xf32> to vector<32x64xf32>
    %7 = arith.addf %4, %6 : vector<32x64xf32>
    %8 = vector.extract_strided_slice %7 {offsets = [0, 0], sizes = [32, 32], strides = [1, 1]} : vector<32x64xf32> to vector<32x32xf32>
    %9 = arith.negf %8 : vector<32x32xf32>
    %10 = math.exp %9 : vector<32x32xf32>
    %cst_7 = arith.constant 1.000000e+00 : f32
    %11 = vector.broadcast %cst_7 : f32 to vector<32x32xf32>
    %12 = arith.addf %11, %10 : vector<32x32xf32>
    %13 = arith.divf %11, %12 : vector<32x32xf32>
    %14 = vector.extract_strided_slice %7 {offsets = [0, 32], sizes = [32, 32], strides = [1, 1]} : vector<32x64xf32> to vector<32x32xf32>
    %15 = arith.negf %14 : vector<32x32xf32>
    %16 = math.exp %15 : vector<32x32xf32>
    %cst_8 = arith.constant 1.000000e+00 : f32
    %17 = vector.broadcast %cst_8 : f32 to vector<32x32xf32>
    %18 = arith.addf %17, %16 : vector<32x32xf32>
    %19 = arith.divf %17, %18 : vector<32x32xf32>
    %20 = arith.mulf %19, %1 : vector<32x32xf32>
    %21 = tpu.concatenate %0, %20 in 1 : vector<32x4xf32>, vector<32x32xf32> -> vector<32x36xf32>
    %c0_9 = arith.constant 0 : index
    %c0_10 = arith.constant 0 : index
    %22 = vector.load %arg4[%c0_9, %c0_10] : memref<36x32xf32, #tpu.memory_space<vmem>>, vector<36x32xf32>
    %cst_11 = arith.constant dense<0.000000e+00> : vector<32x32xf32>
    %23 = tpu.matmul %21, %22, %cst_11 {dimension_numbers = #tpu.dot_dimension_numbers<[1], [0], [0], [1], [0, 0, 1, 1], [], []>} : vector<32x36xf32>, vector<36x32xf32>, vector<32x32xf32> -> vector<32x32xf32>
    %c0_12 = arith.constant 0 : index
    %c0_13 = arith.constant 0 : index
    %24 = vector.load %arg6[%c0_12, %c0_13] : memref<1x32xf32, #tpu.memory_space<vmem>>, vector<1x32xf32>
    %25 = vector.broadcast %24 : vector<1x32xf32> to vector<32x32xf32>
    %26 = arith.addf %23, %25 : vector<32x32xf32>
    %27 = math.tanh %26 : vector<32x32xf32>
    %cst_14 = arith.constant 1.000000e+00 : f32
    %28 = vector.broadcast %cst_14 : f32 to vector<32x32xf32>
    %29 = arith.subf %28, %13 : vector<32x32xf32>
    %30 = arith.mulf %29, %1 : vector<32x32xf32>
    %31 = arith.mulf %13, %27 : vector<32x32xf32>
    %32 = arith.addf %30, %31 : vector<32x32xf32>
    %c0_15 = arith.constant 0 : index
    %c0_16 = arith.constant 0 : index
    %33 = vector.load %arg7[%c0_15, %c0_16] : memref<32x32xf32, #tpu.memory_space<vmem>>, vector<32x32xf32>
    %34 = tpu.concatenate %32, %33 in 1 : vector<32x32xf32>, vector<32x32xf32> -> vector<32x64xf32>
    %c0_17 = arith.constant 0 : index
    %c0_18 = arith.constant 0 : index
    %35 = vector.load %arg8[%c0_17, %c0_18] : memref<64x64xf32, #tpu.memory_space<vmem>>, vector<64x64xf32>
    %cst_19 = arith.constant dense<0.000000e+00> : vector<32x64xf32>
    %36 = tpu.matmul %34, %35, %cst_19 {dimension_numbers = #tpu.dot_dimension_numbers<[1], [0], [0], [1], [0, 0, 1, 1], [], []>} : vector<32x64xf32>, vector<64x64xf32>, vector<32x64xf32> -> vector<32x64xf32>
    %c0_20 = arith.constant 0 : index
    %c0_21 = arith.constant 0 : index
    %37 = vector.load %arg10[%c0_20, %c0_21] : memref<1x64xf32, #tpu.memory_space<vmem>>, vector<1x64xf32>
    %38 = vector.broadcast %37 : vector<1x64xf32> to vector<32x64xf32>
    %39 = arith.addf %36, %38 : vector<32x64xf32>
    %40 = vector.extract_strided_slice %39 {offsets = [0, 0], sizes = [32, 32], strides = [1, 1]} : vector<32x64xf32> to vector<32x32xf32>
    %41 = arith.negf %40 : vector<32x32xf32>
    %42 = math.exp %41 : vector<32x32xf32>
    %cst_22 = arith.constant 1.000000e+00 : f32
    %43 = vector.broadcast %cst_22 : f32 to vector<32x32xf32>
    %44 = arith.addf %43, %42 : vector<32x32xf32>
    %45 = arith.divf %43, %44 : vector<32x32xf32>
    %46 = vector.extract_strided_slice %39 {offsets = [0, 32], sizes = [32, 32], strides = [1, 1]} : vector<32x64xf32> to vector<32x32xf32>
    %47 = arith.negf %46 : vector<32x32xf32>
    %48 = math.exp %47 : vector<32x32xf32>
    %cst_23 = arith.constant 1.000000e+00 : f32
    %49 = vector.broadcast %cst_23 : f32 to vector<32x32xf32>
    %50 = arith.addf %49, %48 : vector<32x32xf32>
    %51 = arith.divf %49, %50 : vector<32x32xf32>
    %52 = arith.mulf %51, %33 : vector<32x32xf32>
    %53 = tpu.concatenate %32, %52 in 1 : vector<32x32xf32>, vector<32x32xf32> -> vector<32x64xf32>
    %c0_24 = arith.constant 0 : index
    %c0_25 = arith.constant 0 : index
    %54 = vector.load %arg9[%c0_24, %c0_25] : memref<64x32xf32, #tpu.memory_space<vmem>>, vector<64x32xf32>
    %cst_26 = arith.constant dense<0.000000e+00> : vector<32x32xf32>
    %55 = tpu.matmul %53, %54, %cst_26 {dimension_numbers = #tpu.dot_dimension_numbers<[1], [0], [0], [1], [0, 0, 1, 1], [], []>} : vector<32x64xf32>, vector<64x32xf32>, vector<32x32xf32> -> vector<32x32xf32>
    %c0_27 = arith.constant 0 : index
    %c0_28 = arith.constant 0 : index
    %56 = vector.load %arg11[%c0_27, %c0_28] : memref<1x32xf32, #tpu.memory_space<vmem>>, vector<1x32xf32>
    %57 = vector.broadcast %56 : vector<1x32xf32> to vector<32x32xf32>
    %58 = arith.addf %55, %57 : vector<32x32xf32>
    %59 = math.tanh %58 : vector<32x32xf32>
    %cst_29 = arith.constant 1.000000e+00 : f32
    %60 = vector.broadcast %cst_29 : f32 to vector<32x32xf32>
    %61 = arith.subf %60, %45 : vector<32x32xf32>
    %62 = arith.mulf %61, %33 : vector<32x32xf32>
    %63 = arith.mulf %45, %59 : vector<32x32xf32>
    %64 = arith.addf %62, %63 : vector<32x32xf32>
    %65 = tpu.concatenate %32, %64 in 1 : vector<32x32xf32>, vector<32x32xf32> -> vector<32x64xf32>
    %c0_30 = arith.constant 0 : index
    %c0_31 = arith.constant 0 : index
    %66 = vector.load %arg12[%c0_30, %c0_31] : memref<32x64xf32, #tpu.memory_space<vmem>>, vector<32x64xf32>
    tpu.vector_store %arg12[%c0_30, %c0_31], %65 {strides = array<i32>} : memref<32x64xf32, #tpu.memory_space<vmem>>, vector<32x64xf32>,
    return
  }
  func.func @transform_0(%arg0: i32) -> (i32, i32) {
    %c0_i32 = arith.constant 0 : i32
    %c0_i32_0 = arith.constant 0 : i32
    return %arg0, %c0_i32 : i32, i32
  }
  func.func @transform_1(%arg0: i32) -> (i32, i32) {
    %c0_i32 = arith.constant 0 : i32
    %c0_i32_0 = arith.constant 0 : i32
    return %arg0, %c0_i32 : i32, i32
  }
  func.func @transform_2(%arg0: i32) -> (i32, i32) {
    %c0_i32 = arith.constant 0 : i32
    %c0_i32_0 = arith.constant 0 : i32
    %c0_i32_1 = arith.constant 0 : i32
    return %c0_i32, %c0_i32_0 : i32, i32
  }
  func.func @transform_3(%arg0: i32) -> (i32, i32) {
    %c0_i32 = arith.constant 0 : i32
    %c0_i32_0 = arith.constant 0 : i32
    %c0_i32_1 = arith.constant 0 : i32
    return %c0_i32, %c0_i32_0 : i32, i32
  }
  func.func @transform_4(%arg0: i32) -> (i32, i32) {
    %c0_i32 = arith.constant 0 : i32
    %c0_i32_0 = arith.constant 0 : i32
    %c0_i32_1 = arith.constant 0 : i32
    return %c0_i32, %c0_i32_0 : i32, i32
  }
  func.func @transform_5(%arg0: i32) -> (i32, i32) {
    %c0_i32 = arith.constant 0 : i32
    %c0_i32_0 = arith.constant 0 : i32
    %c0_i32_1 = arith.constant 0 : i32
    return %c0_i32, %c0_i32_0 : i32, i32
  }
  func.func @transform_6(%arg0: i32) -> (i32, i32) {
    %c0_i32 = arith.constant 0 : i32
    %c0_i32_0 = arith.constant 0 : i32
    return %arg0, %c0_i32 : i32, i32
  }
  func.func @transform_7(%arg0: i32) -> (i32, i32) {
    %c0_i32 = arith.constant 0 : i32
    %c0_i32_0 = arith.constant 0 : i32
    %c0_i32_1 = arith.constant 0 : i32
    return %c0_i32, %c0_i32_0 : i32, i32
  }
  func.func @transform_8(%arg0: i32) -> (i32, i32) {
    %c0_i32 = arith.constant 0 : i32
    %c0_i32_0 = arith.constant 0 : i32
    %c0_i32_1 = arith.constant 0 : i32
    return %c0_i32, %c0_i32_0 : i32, i32
  }
  func.func @transform_9(%arg0: i32) -> (i32, i32) {
    %c0_i32 = arith.constant 0 : i32
    %c0_i32_0 = arith.constant 0 : i32
    %c0_i32_1 = arith.constant 0 : i32
    return %c0_i32, %c0_i32_0 : i32, i32
  }
  func.func @transform_10(%arg0: i32) -> (i32, i32) {
    %c0_i32 = arith.constant 0 : i32
    %c0_i32_0 = arith.constant 0 : i32
    %c0_i32_1 = arith.constant 0 : i32
    return %c0_i32, %c0_i32_0 : i32, i32
  }
  func.func @transform_11(%arg0: i32) -> (i32, i32) {
    %c0_i32 = arith.constant 0 : i32
    %c0_i32_0 = arith.constant 0 : i32
    return %arg0, %c0_i32 : i32, i32
  }
}

</mosaic_0001>

<bundles_post_ra>
// kernel: tpu_custom_call.1
= control target key start
LH: loop header
LB: loop body
LE: loop exit
PB: predicated region body
PF: predicated region fallthrough
CT: control target
= control target key end

     0   :  { %16 = vsyncpa [#allocation3], 0  ;;  %s1405_s0 = inlined_call_operand.vmem [shape: f32[32,4], index: 0, kind: input, shape index: {}]   ;;  %s1406_s1 = inlined_call_operand.vmem [shape: f32[32,32], index: 1, kind: input, shape index: {}]   ;;  %s1407_s2 = inlined_call_operand.vmem [shape: f32[36,64], index: 2, kind: input, shape index: {}]   ;;  %s1408_s3 = inlined_call_operand.vmem [shape: f32[36,32], index: 3, kind: input, shape index: {}]   ;;  %s1409_s4 = inlined_call_operand.vmem [shape: f32[1,64], index: 4, kind: input, shape index: {}]   ;;  %s1410_s5 = inlined_call_operand.vmem [shape: f32[1,32], index: 5, kind: input, shape index: {}]   ;;  %s1411_s6 = inlined_call_operand.hbm [shape: f32[32,32], index: 6, kind: input, shape index: {}]   ;;  %s1412_s7 = inlined_call_operand.vmem [shape: f32[64,64], index: 7, kind: input, shape index: {}]   ;;  %s1413_s8 = inlined_call_operand.vmem [shape: f32[64,32], index: 8, kind: input, shape index: {}]   ;;  %s1414_s9 = inlined_call_operand.vmem [shape: f32[1,64], index: 9, kind: input, shape index: {}]   ;;  %s1415_s10 = inlined_call_operand.vmem [shape: f32[1,32], index: 10, kind: input, shape index: {}]   ;;  %s1416_s11 = inlined_call_operand.hbm [shape: f32[32,64], index: 11, kind: output, shape index: {}]  }
   0x1   :  { %17 = vsyncpa [#allocation4], 0  ;;  %s1030_s17 = smov [#allocation2]   ;;  %s982_s21 = scalar_lea.hbm %s1411_s6, 512 }
   0x2   :  { %s35_s18 = sshll.u32 %s1030_s17, 4  ;;  %p983_p0 = scmp.ne.s32.totalorder %s1411_s6, %s982_s21  ;;  %s36_s18 = int_to_ptr.vmem [resolvable:$true] %s35_s18 }
   0x3   :  { %p986_p1 = scmp.lt.u32.totalorder %s982_s21, %s1411_s6 }
   0x5   :  { %p988_p2 = pnand %p986_p1, %p983_p0 }
   0x7   :  { %991 = shalt.err (!%p988_p2)
}
   0x8   :  { %s992_s26 = scalar_lea.vmem %s36_s18, 512  ;;  %p997_p4 = scmp.lt.s32.totalorder %s36_s18, %s36_s18 }
   0x9   :  { %p993_p3 = scmp.ne.s32.totalorder %s36_s18, %s992_s26  ;;  %p998_p5 = scmp.lt.s32.totalorder %s992_s26, %s992_s26 }
   0xb   :  { %p999_p6 = por %p998_p5, %p997_p4 }
   0xd   :  { %p1000_p7 = pnand %p999_p6, %p993_p3 }
   0xf   :  { %1003 = shalt.err (!%p1000_p7)
}
  0x10   :  { %s1031_s27 = smov 128   ;;  %s1032_s28 = smov 8  }
  0x11   :  { %41 = dma.hbm_to_vmem [thread:$0]  %s1411_s6, 512, %s36_s18, [#allocation3], %s1031_s27, %s1031_s27, %s1032_s28  }
  0x12   :  { %1026 = dma.done.wait [#allocation3], 512  }
  0x13   :  { %1027 = vsyncadd [#allocation3], 4294966784  ;;  %v1115_v0 = vld [vmem:[%s1406_s1] sm:$0xff]  ;;  %v1120_v1 = vld [vmem:[%s1406_s1 + $0x10] sm:$0xff]  ;;  %s1033_s19 = smov 4   ;;  %vm107_vm0 = vcmask 1043456  }
  0x14   :  { %v1125_v2 = vld [vmem:[%s1406_s1 + $0x8] sm:$0xff]  ;;  %65 = vrot.lane.b32.xlu0 %v1115_v0, %s1033_s19  ;;  %69 = vrot.lane.b32.xlu1 %v1120_v1, %s1033_s19  ;;  %v1132_v3 = vld [vmem:[%s1406_s1 + $0x18] sm:$0xff]  ;;  %s1034_s12 = smov 32   ;;  %vm77_vm1 = vcmask 31744   ;;  %vm94_vm2 = vcmask 293888   ;;  %vm408_vm3 = vcmask 261120  }
  0x15   :  { %v82_v4 = vld [vmem:[%s1407_s2] sm:$0xff]  ;;  %v83_v5 = vld [vmem:[%s1407_s2 + $0x8] sm:$0xff]  ;;  %v84_v6 = vld [vmem:[%s1407_s2 + $0x10] sm:$0xff]  ;;  %vm428_vm4 = vcmask 523264  }
  0x16   :  { %v85_v7 = vld [vmem:[%s1407_s2 + $0x18] sm:$0xff]  ;;  %v879_v8 = vpack.c.bf16 %v83_v5, %v82_v4  ;;  %v86_v10 = vld [vmem:[%s1407_s2 + $0x20] sm:$0xf]  ;;  %v1171_v15 = vld [vmem:[%s1405_s0 + $0x10] sm:$0xff] }
  0x17   :  { %v883_v9 = vpack.c.bf16 %v85_v7, %v84_v6  ;;  %v1164_v11 = vld [vmem:[%s1405_s0] sm:$0xff]  ;;  %v1177_v16 = vld [vmem:[%s1405_s0 + $0x8] sm:$0xff]  ;;  %v1184_v20 = vld [vmem:[%s1405_s0 + $0x18] sm:$0xff] }
  0x18   :  { %67 = vrot.lane.b32.xlu0 %v1125_v2, %s1033_s19  ;;  %71 = vrot.lane.b32.xlu1 %v1132_v3, %s1033_s19  ;;  %v256_v23 = vld [vmem:[%s1408_s3] sm:$0xff]  ;;  %v257_v24 = vld [vmem:[%s1408_s3 + $0x8] sm:$0xff]  ;;  %v1233_v5 = vld [vmem:[#allocation2 + $0x18] sm:$0xff] }
  0x19   :  { %880 = vmatprep.subr.bf16.mxu0 %v879_v8  ;;  %v258_v25 = vld [vmem:[%s1408_s3 + $0x10] sm:$0xff]  ;;  %v887_v26 = vpack.c.bf16 %v257_v24, %v256_v23  ;;  %v259_v27 = vld [vmem:[%s1408_s3 + $0x18] sm:$0xff]  ;;  %v731_v29 = vld [vmem:[%s1409_s4] ss:$0 sm:$0xff] }
  0x1a   :  { %882 = vmatpush3.bf16.msra.mxu0 %v879_v8  ;;  %v891_v28 = vpack.c.bf16 %v259_v27, %v258_v25  ;;  %v260_v46 = vld [vmem:[%s1408_s3 + $0x20] sm:$0xf]  ;;  %s1035_s3 = smov 100   ;;  %v1225_v63 = vld [vmem:[#allocation2 + $0x8] sm:$0xff]  ;;  %v1235_v6 = vld [vmem:[#allocation2 + $0x10] sm:$0xff] }
  0x1b   :  { %884 = vmatprep.subr.bf16.mxu0 %v883_v9  ;;  %888 = vmatprep.subr.bf16.mxu1 %v887_v26  ;;  %v1227_v4 = vld [vmem:[#allocation2] sm:$0xff]  ;;  %v419_v23 = vld [vmem:[%s1412_s7 + $0x30] sm:$0xff]  ;;  %v420_v25 = vld [vmem:[%s1412_s7 + $0x38] sm:$0xff] }
  0x1c   :  { %222 = vrot.lane.b32.xlu1 %v1125_v2, %s1034_s12  ;;  %220 = vrot.lane.b32.xlu0 %v1115_v0, %s1034_s12  ;;  %v741_v27 = vld [vmem:[%s1410_s5] ss:$0 sm:$0xff] }
  0x1d   :  { %890 = vmatpush3.bf16.msra.mxu1 %v887_v26  ;;  %v907_v26 = vpack.c.bf16 %v420_v25, %v419_v23 }
  0x1e   :  { %886 = vmatpush3.bf16.msra.mxu0 %v883_v9  ;;  %892 = vmatprep.subr.bf16.mxu1 %v891_v28 }
  0x1f   :  { %811 = vmatprep.subr.msk.mxu0 %vm107_vm0, %v86_v10 }
  0x20   :  { %226 = vrot.lane.b32.xlu1 %v1132_v3, %s1034_s12  ;;  %224 = vrot.lane.b32.xlu0 %v1120_v1, %s1034_s12 }
  0x21   :  { %894 = vmatpush3.bf16.msra.mxu1 %v891_v28 }
  0x22   :  { %812 = vmatpush3.msk.msra.mxu0 %vm107_vm0, %v86_v10  ;;  %827 = vmatprep.subr.msk.mxu1 %vm107_vm0, %v260_v46 }
  0x25   :  { %828 = vmatpush3.msk.msra.mxu1 %vm107_vm0, %v260_v46 }
  0x86   :  { %v66_v12 = vpop.permute.xlu0 %65  ;;  %v70_v13 = vpop.permute.xlu1 %69 }
  0x87   :  { %v78_v14 = vsel %vm77_vm1, %v1164_v11, %v66_v12  ;;  %v80_v17 = vsel %vm77_vm1, %v1171_v15, %v70_v13 }
  0x88   :  { %813 = vmatprep.mubr.msk.f32.mxu0 %vm94_vm2, %v78_v14 }
  0x8a   :  { %v68_v18 = vpop.permute.xlu0 %67  ;;  %v72_v19 = vpop.permute.xlu1 %71 }
  0x8b   :  { %v79_v21 = vsel %vm77_vm1, %v1177_v16, %v68_v18  ;;  %v81_v22 = vsel %vm77_vm1, %v1184_v20, %v72_v19  ;;  %v416_v19 = vld [vmem:[%s1412_s7 + $0x18] sm:$0xff] }
  0x8c   :  { %814 = vmatmul.mubr.msk.f32.vlgmr.msra.gmra.mrb[0].mxu0 %vm94_vm2, %v79_v21  ;;  %v417_v21 = vld [vmem:[%s1412_s7 + $0x20] sm:$0xff] }
  0x8d   :  { %816 = vmatprep.mubr.msk.f32.mxu0 %vm94_vm2, %v80_v17 }
  0x8e   :  { %v223_v51 = vpop.permute.xlu1 %222  ;;  %v221_v52 = vpop.permute.xlu0 %220 }
  0x90   :  { %817 = vmatmul.mubr.msk.f32.gmra.mrb[2].mxu0 %vm94_vm2, %v81_v22  ;;  %v418_v22 = vld [vmem:[%s1412_s7 + $0x28] sm:$0xff] }
  0x91   :  { %v903_v24 = vpack.c.bf16 %v418_v22, %v417_v21 }
  0x92   :  { %v227_v57 = vpop.permute.xlu1 %226  ;;  %v225_v58 = vpop.permute.xlu0 %224 }
 0x15f   :  { %v815_v30 = vpop.f32.mrb[0].mxu0 }
 0x160   :  { %v183_v31 = vadd.f32 %v815_v30, %v731_v29  ;;  %v177_v32 = vpop.f32.mrb[1].mxu0 }
 0x161   :  { %v178_v33 = vadd.f32 %v731_v29, %v177_v32 }
 0x162   :  { %v738_v34 = vmul.f32 -1.442695, %v183_v31 }
 0x163   :  { %v737_v35 = vmul.f32 -1.442695, %v178_v33  ;;  %v818_v36 = vpop.f32.mrb[2].mxu0 }
 0x164   :  { %934 = vpow2.f32 %v738_v34  ;;  %v193_v37 = vadd.f32 %v818_v36, %v731_v29  ;;  %v187_v38 = vpop.f32.mrb[3].mxu0 }
 0x165   :  { %936 = vpow2.f32 %v737_v35  ;;  %v188_v39 = vadd.f32 %v731_v29, %v187_v38 }
 0x166   :  { %v740_v40 = vmul.f32 -1.442695, %v193_v37 }
 0x167   :  { %v739_v41 = vmul.f32 -1.442695, %v188_v39 }
 0x168   :  { %938 = vpow2.f32 %v740_v40 }
 0x169   :  { %940 = vpow2.f32 %v739_v41 }
 0x16e   :  { %v935_v42 = vpop.eup %934 }
 0x16f   :  { %v937_v43 = vpop.eup %936  ;;  %v209_v44 = vadd.f32 1.0, %v935_v42 }
 0x170   :  { %v208_v45 = vadd.f32 1.0, %v937_v43 }
 0x171   :  { %942 = vrcp.f32 %v209_v44 }
 0x172   :  { %v939_v47 = vpop.eup %938  ;;  %944 = vrcp.f32 %v208_v45 }
 0x173   :  { %v941_v48 = vpop.eup %940  ;;  %v211_v49 = vadd.f32 1.0, %v939_v47 }
 0x174   :  { %v210_v50 = vadd.f32 1.0, %v941_v48 }
 0x175   :  { %946 = vrcp.f32 %v211_v49 }
 0x176   :  { %948 = vrcp.f32 %v210_v50 }
 0x17b   :  { %v1213_v53 = vpop.eup %942 }
 0x17c   :  { %v1215_v54 = vpop.eup %944  ;;  %v233_v55 = vmul.f32 %v1213_v53, %v223_v51  ;;  %v373_v36 = vsub.f32 1.0, %v1213_v53 }
 0x17d   :  { %v232_v56 = vmul.f32 %v1215_v54, %v221_v52  ;;  %v372_v37 = vsub.f32 1.0, %v1215_v54 }
 0x17e   :  { %242 = vrot.lane.b32.xlu1 %v233_v55, %s1035_s3  ;;  %v377_v40 = vmul.f32 %v373_v36, %v1125_v2 }
 0x17f   :  { %v1219_v59 = vpop.eup %946  ;;  %240 = vrot.lane.b32.xlu0 %v232_v56, %s1035_s3  ;;  %v376_v45 = vmul.f32 %v372_v37, %v1115_v0 }
 0x180   :  { %v1221_v60 = vpop.eup %948  ;;  %v235_v61 = vmul.f32 %v1219_v59, %v227_v57  ;;  %v375_v43 = vsub.f32 1.0, %v1219_v59 }
 0x181   :  { %v234_v62 = vmul.f32 %v1221_v60, %v225_v58  ;;  %v374_v47 = vsub.f32 1.0, %v1221_v60 }
 0x182   :  { %246 = vrot.lane.b32.xlu1 %v235_v61, %s1035_s3  ;;  %v379_v51 = vmul.f32 %v375_v43, %v1132_v3  ;;  %v559_v61 = vld [vmem:[%s1413_s8 + $0x8] sm:$0xff] }
 0x183   :  { %244 = vrot.lane.b32.xlu0 %v234_v62, %s1035_s3 }
 0x186   :  { %398 = vrot.lane.b32.xlu1 %v1225_v63, %s1034_s12 }
 0x187   :  { %396 = vrot.lane.b32.xlu0 %v1227_v4, %s1034_s12 }
 0x18a   :  { %402 = vrot.lane.b32.xlu1 %v1233_v5, %s1034_s12 }
 0x18b   :  { %400 = vrot.lane.b32.xlu0 %v1235_v6, %s1034_s12 }
 0x1f0   :  { %v243_v7 = vpop.permute.xlu1 %242 }
 0x1f1   :  { %v241_v8 = vpop.permute.xlu0 %240  ;;  %v253_v10 = vsel %vm77_vm1, %v1177_v16, %v243_v7  ;;  %v414_v16 = vld [vmem:[%s1412_s7 + $0x8] sm:$0xff]  ;;  %v560_v7 = vld [vmem:[%s1413_s8 + $0x10] sm:$0xff] }
 0x1f2   :  { %v252_v9 = vsel %vm77_vm1, %v1164_v11, %v241_v8  ;;  %v413_v11 = vld [vmem:[%s1412_s7] sm:$0xff]  ;;  %v561_v8 = vld [vmem:[%s1413_s8 + $0x18] sm:$0xff] }
 0x1f3   :  { %829 = vmatprep.mubr.msk.f32.mxu1 %vm94_vm2, %v252_v9  ;;  %v895_v18 = vpack.c.bf16 %v414_v16, %v413_v11  ;;  %v915_v9 = vpack.c.bf16 %v561_v8, %v560_v7  ;;  %v747_v16 = vld [vmem:[%s1414_s9] ss:$0 sm:$0xff] }
 0x1f4   :  { %v247_v12 = vpop.permute.xlu1 %246  ;;  %830 = vmatmul.mubr.msk.f32.vlgmr.msra.gmra.mrb[0].mxu1 %vm94_vm2, %v253_v10  ;;  %v562_v10 = vld [vmem:[%s1413_s8 + $0x20] sm:$0xff] }
 0x1f5   :  { %v245_v13 = vpop.permute.xlu0 %244  ;;  %v255_v17 = vsel %vm77_vm1, %v1184_v20, %v247_v12  ;;  %896 = vmatprep.subr.bf16.mxu0 %v895_v18  ;;  %v563_v12 = vld [vmem:[%s1413_s8 + $0x28] sm:$0xff] }
 0x1f6   :  { %v254_v14 = vsel %vm77_vm1, %v1171_v15, %v245_v13  ;;  %898 = vmatpush3.bf16.msra.mxu0 %v895_v18  ;;  %v415_v15 = vld [vmem:[%s1412_s7 + $0x10] sm:$0xff] }
 0x1f7   :  { %832 = vmatprep.mubr.msk.f32.mxu1 %vm94_vm2, %v254_v14  ;;  %v899_v20 = vpack.c.bf16 %v416_v19, %v415_v15  ;;  %v564_v13 = vld [vmem:[%s1413_s8 + $0x30] sm:$0xff]  ;;  %v919_v14 = vpack.c.bf16 %v563_v12, %v562_v10 }
 0x1f8   :  { %833 = vmatmul.mubr.msk.f32.gmra.mrb[2].mxu1 %vm94_vm2, %v255_v17  ;;  %v1287_v44 = vpop.permute.xlu1 %398  ;;  %v565_v17 = vld [vmem:[%s1413_s8 + $0x38] sm:$0xff] }
 0x1f9   :  { %900 = vmatprep.subr.bf16.mxu0 %v899_v20  ;;  %v1284_v42 = vpop.permute.xlu0 %396  ;;  %v923_v11 = vpack.c.bf16 %v565_v17, %v564_v13 }
 0x1fa   :  { %902 = vmatpush3.bf16.msra.mxu0 %v899_v20 }
 0x1fb   :  { %904 = vmatprep.subr.bf16.mxu0 %v903_v24 }
 0x1fc   :  { %v1311_v3 = vpop.permute.xlu1 %402 }
 0x1fd   :  { %v1309_v57 = vpop.permute.xlu0 %400 }
 0x1fe   :  { %906 = vmatpush3.bf16.msra.mxu0 %v903_v24 }
 0x1ff   :  { %908 = vmatprep.subr.bf16.mxu0 %v907_v26 }
 0x202   :  { %910 = vmatpush3.bf16.msra.mxu0 %v907_v26 }
 0x2c7   :  { %v831_v28 = vpop.f32.mrb[0].mxu1 }
 0x2c8   :  { %v355_v29 = vadd.f32 %v831_v28, %v741_v27  ;;  %v349_v30 = vpop.f32.mrb[1].mxu1 }
 0x2c9   :  { %v350_v31 = vadd.f32 %v741_v27, %v349_v30 }
 0x2ca   :  { %950 = vtanh.f32 %v355_v29 }
 0x2cb   :  { %952 = vtanh.f32 %v350_v31  ;;  %v834_v32 = vpop.f32.mrb[2].mxu1 }
 0x2cc   :  { %v365_v33 = vadd.f32 %v834_v32, %v741_v27  ;;  %v359_v34 = vpop.f32.mrb[3].mxu1 }
 0x2cd   :  { %v360_v35 = vadd.f32 %v741_v27, %v359_v34 }
 0x2ce   :  { %954 = vtanh.f32 %v365_v33 }
 0x2cf   :  { %956 = vtanh.f32 %v360_v35 }
 0x2d4   :  { %v951_v38 = vpop.eup %950 }
 0x2d5   :  { %v953_v39 = vpop.eup %952  ;;  %v381_v41 = vmul.f32 %v951_v38, %v1213_v53  ;;  %v378_v53 = vmul.f32 %v374_v47, %v1120_v1 }
 0x2d6   :  { %v380_v46 = vmul.f32 %v953_v39, %v1215_v54 }
 0x2d7   :  { %v1292_v48 = vadd.f32 %v381_v41, %v377_v40 }
 0x2d8   :  { %v955_v49 = vpop.eup %954  ;;  %v1294_v50 = vadd.f32 %v380_v46, %v376_v45 }
 0x2d9   :  { %v957_v2 = vpop.eup %956  ;;  %v383_v52 = vmul.f32 %v955_v49, %v1219_v59  ;;  %v410_v55 = vsel %vm408_vm3, %v1292_v48, %v1287_v44 }
 0x2da   :  { %v409_v0 = vsel %vm408_vm3, %v1294_v50, %v1284_v42  ;;  %v382_v54 = vmul.f32 %v957_v2, %v1221_v60  ;;  %v558_v60 = vld [vmem:[%s1413_s8] sm:$0xff] }
 0x2db   :  { %851 = vmatprep.mubr.msk.f32.mxu0 %vm428_vm4, %v409_v0  ;;  %v1307_v56 = vadd.f32 %v383_v52, %v379_v51  ;;  %v911_v62 = vpack.c.bf16 %v559_v61, %v558_v60  ;;  %v756_v2 = vld [vmem:[%s1415_s10] ss:$0 sm:$0xff]  ;;  %s1036_s10 = smov [#allocation5]  }
 0x2dc   :  { %852 = vmatmul.mubr.msk.f32.vlgmr.msra.gmra.mrb[4].mxu0 %vm428_vm4, %v410_v55  ;;  %v1314_v58 = vadd.f32 %v382_v54, %v378_v53  ;;  %s719_s22 = sshll.u32 %s1036_s10, 4  ;;  %s720_s22 = int_to_ptr.vmem [resolvable:$true] %s719_s22 }
 0x2dd   :  { %v412_v59 = vsel %vm408_vm3, %v1307_v56, %v1311_v3  ;;  %912 = vmatprep.subr.bf16.mxu1 %v911_v62  ;;  %p1009_p9 = scmp.lt.s32.totalorder %s720_s22, %s720_s22 }
 0x2de   :  { %v411_v1 = vsel %vm408_vm3, %v1314_v58, %v1309_v57  ;;  %914 = vmatpush3.bf16.msra.mxu1 %v911_v62 }
 0x2df   :  { %854 = vmatprep.mubr.msk.f32.mxu0 %vm428_vm4, %v411_v1  ;;  %916 = vmatprep.subr.bf16.mxu1 %v915_v9 }
 0x2e0   :  { %855 = vmatmul.mubr.msk.f32.gmra.mrb[6].mxu0 %vm428_vm4, %v412_v59 }
 0x2e2   :  { %918 = vmatpush3.bf16.msra.mxu1 %v915_v9 }
 0x2e3   :  { %920 = vmatprep.subr.bf16.mxu1 %v919_v14 }
 0x2e6   :  { %922 = vmatpush3.bf16.msra.mxu1 %v919_v14 }
 0x2e7   :  { %924 = vmatprep.subr.bf16.mxu1 %v923_v11 }
 0x2ea   :  { %926 = vmatpush3.bf16.msra.mxu1 %v923_v11 }
 0x3af   :  { %v853_v18 = vpop.f32.mrb[4].mxu0 }
 0x3b0   :  { %v513_v15 = vadd.f32 %v853_v18, %v747_v16  ;;  %v507_v19 = vpop.f32.mrb[5].mxu0 }
 0x3b1   :  { %v508_v20 = vadd.f32 %v747_v16, %v507_v19 }
 0x3b2   :  { %v753_v21 = vmul.f32 -1.442695, %v513_v15 }
 0x3b3   :  { %v752_v22 = vmul.f32 -1.442695, %v508_v20  ;;  %v856_v23 = vpop.f32.mrb[6].mxu0 }
 0x3b4   :  { %958 = vpow2.f32 %v753_v21  ;;  %v523_v24 = vadd.f32 %v856_v23, %v747_v16  ;;  %v517_v25 = vpop.f32.mrb[7].mxu0 }
 0x3b5   :  { %960 = vpow2.f32 %v752_v22  ;;  %v518_v26 = vadd.f32 %v747_v16, %v517_v25 }
 0x3b6   :  { %v755_v27 = vmul.f32 -1.442695, %v523_v24 }
 0x3b7   :  { %v754_v28 = vmul.f32 -1.442695, %v518_v26 }
 0x3b8   :  { %962 = vpow2.f32 %v755_v27 }
 0x3b9   :  { %964 = vpow2.f32 %v754_v28 }
 0x3be   :  { %v959_v29 = vpop.eup %958 }
 0x3bf   :  { %v961_v30 = vpop.eup %960  ;;  %v539_v31 = vadd.f32 1.0, %v959_v29 }
 0x3c0   :  { %v538_v32 = vadd.f32 1.0, %v961_v30 }
 0x3c1   :  { %966 = vrcp.f32 %v539_v31 }
 0x3c2   :  { %v963_v33 = vpop.eup %962  ;;  %968 = vrcp.f32 %v538_v32 }
 0x3c3   :  { %v965_v34 = vpop.eup %964  ;;  %v541_v35 = vadd.f32 1.0, %v963_v33 }
 0x3c4   :  { %v540_v36 = vadd.f32 1.0, %v965_v34 }
 0x3c5   :  { %970 = vrcp.f32 %v541_v35 }
 0x3c6   :  { %972 = vrcp.f32 %v540_v36 }
 0x3cb   :  { %v967_v37 = vpop.eup %966 }
 0x3cc   :  { %v969_v38 = vpop.eup %968  ;;  %v551_v39 = vmul.f32 %v967_v37, %v1287_v44  ;;  %v675_v1 = vsub.f32 1.0, %v967_v37 }
 0x3cd   :  { %v550_v40 = vmul.f32 %v969_v38, %v1284_v42  ;;  %v674_v59 = vsub.f32 1.0, %v969_v38 }
 0x3ce   :  { %v555_v46 = vsel %vm408_vm3, %v1292_v48, %v551_v39  ;;  %v679_v62 = vmul.f32 %v675_v1, %v1225_v63 }
 0x3cf   :  { %v971_v41 = vpop.eup %970  ;;  %v554_v43 = vsel %vm408_vm3, %v1294_v50, %v550_v40  ;;  %v678_v9 = vmul.f32 %v674_v59, %v1227_v4 }
 0x3d0   :  { %v973_v45 = vpop.eup %972  ;;  %873 = vmatprep.mubr.msk.f32.mxu1 %vm428_vm4, %v554_v43  ;;  %v553_v47 = vmul.f32 %v971_v41, %v1311_v3  ;;  %v677_v8 = vsub.f32 1.0, %v971_v41 }
 0x3d1   :  { %874 = vmatmul.mubr.msk.f32.vlgmr.msra.gmra.mrb[4].mxu1 %vm428_vm4, %v555_v46  ;;  %v552_v49 = vmul.f32 %v973_v45, %v1309_v57  ;;  %v676_v12 = vsub.f32 1.0, %v973_v45 }
 0x3d2   :  { %v557_v42 = vsel %vm408_vm3, %v1307_v56, %v553_v47  ;;  %v681_v16 = vmul.f32 %v677_v8, %v1233_v5 }
 0x3d3   :  { %v556_v44 = vsel %vm408_vm3, %v1314_v58, %v552_v49  ;;  %v680_v15 = vmul.f32 %v676_v12, %v1235_v6 }
 0x3d4   :  { %876 = vmatprep.mubr.msk.f32.mxu1 %vm428_vm4, %v556_v44 }
 0x3d5   :  { %877 = vmatmul.mubr.msk.f32.gmra.mrb[6].mxu1 %vm428_vm4, %v557_v42 }
 0x4a4   :  { %v875_v51 = vpop.f32.mrb[4].mxu1 }
 0x4a5   :  { %v657_v52 = vadd.f32 %v875_v51, %v756_v2  ;;  %v651_v0 = vpop.f32.mrb[5].mxu1 }
 0x4a6   :  { %v652_v53 = vadd.f32 %v756_v2, %v651_v0 }
 0x4a7   :  { %974 = vtanh.f32 %v657_v52 }
 0x4a8   :  { %976 = vtanh.f32 %v652_v53  ;;  %v878_v54 = vpop.f32.mrb[6].mxu1 }
 0x4a9   :  { %v667_v55 = vadd.f32 %v878_v54, %v756_v2  ;;  %v661_v57 = vpop.f32.mrb[7].mxu1 }
 0x4aa   :  { %v662_v3 = vadd.f32 %v756_v2, %v661_v57 }
 0x4ab   :  { %978 = vtanh.f32 %v667_v55 }
 0x4ac   :  { %980 = vtanh.f32 %v662_v3 }
 0x4b1   :  { %v975_v60 = vpop.eup %974 }
 0x4b2   :  { %v977_v61 = vpop.eup %976  ;;  %v683_v7 = vmul.f32 %v975_v60, %v967_v37 }
 0x4b3   :  { %v682_v10 = vmul.f32 %v977_v61, %v969_v38 }
 0x4b4   :  { %v687_v13 = vadd.f32 %v683_v7, %v679_v62 }
 0x4b5   :  { %v979_v14 = vpop.eup %978  ;;  %v686_v17 = vadd.f32 %v682_v10, %v678_v9 }
 0x4b6   :  { %v981_v11 = vpop.eup %980  ;;  %696 = vrot.lane.b32.xlu1 %v687_v13, %s1034_s12  ;;  %v685_v18 = vmul.f32 %v979_v14, %v971_v41 }
 0x4b7   :  { %694 = vrot.lane.b32.xlu0 %v686_v17, %s1034_s12  ;;  %v684_v63 = vmul.f32 %v981_v11, %v973_v45 }
 0x4b8   :  { %v689_v19 = vadd.f32 %v685_v18, %v681_v16 }
 0x4b9   :  { %v688_v20 = vadd.f32 %v684_v63, %v680_v15 }
 0x4ba   :  { %700 = vrot.lane.b32.xlu1 %v689_v19, %s1034_s12 }
 0x4bb   :  { %698 = vrot.lane.b32.xlu0 %v688_v20, %s1034_s12  ;;  %s1004_s12 = scalar_lea.vmem %s720_s22, 512 }
 0x4bc   :  { %p1005_p8 = scmp.ne.s32.totalorder %s720_s22, %s1004_s12  ;;  %p1010_p10 = scmp.lt.s32.totalorder %s1004_s12, %s1004_s12 }
 0x4be   :  { %p1011_p11 = por %p1010_p10, %p1009_p9 }
 0x4c0   :  { %p1012_p12 = pnand %p1011_p11, %p1005_p8 }
 0x528   :  { %v697_v4 = vpop.permute.xlu1 %696 }
 0x529   :  { %v707_v21 = vsel %vm408_vm3, %v1292_v48, %v697_v4  ;;  %v695_v22 = vpop.permute.xlu0 %694 }
 0x52a   :  { %711 = vst.msk [vmem:[#allocation5 + $0x8] sm:$0xff] %vm428_vm4, %v707_v21  ;;  %v706_v5 = vsel %vm408_vm3, %v1294_v50, %v695_v22 }
 0x52b   :  { %710 = vst.msk [vmem:[#allocation5] sm:$0xff] %vm428_vm4, %v706_v5 }
 0x52c   :  { %v701_v6 = vpop.permute.xlu1 %700 }
 0x52d   :  { %v709_v23 = vsel %vm408_vm3, %v1307_v56, %v701_v6  ;;  %v699_v24 = vpop.permute.xlu0 %698 }
 0x52e   :  { %713 = vst.msk [vmem:[#allocation5 + $0x18] sm:$0xff] %vm428_vm4, %v709_v23  ;;  %v708_v48 = vsel %vm408_vm3, %v1314_v58, %v699_v24 }
 0x52f   :  { %712 = vst.msk [vmem:[#allocation5 + $0x10] sm:$0xff] %vm428_vm4, %v708_v48 }
 0x530   :  { %1015 = shalt.err (!%p1012_p12)
}
 0x531   :  { %s1016_s24 = scalar_lea.hbm %s1416_s11, 512 }
 0x532   :  { %p1017_p13 = scmp.ne.s32.totalorder %s1416_s11, %s1016_s24  ;;  %p1020_p0 = scmp.lt.u32.totalorder %s1016_s24, %s1416_s11 }
 0x534   :  { %p1022_p1 = pnand %p1020_p0, %p1017_p13 }
 0x536   :  { %1025 = shalt.err (!%p1022_p1)
}
 0x537   :  { %725 = dma.vmem_to_hbm [thread:$0]  %s720_s22, 512, %s1416_s11, [#allocation4], %s1031_s27, %s1031_s27, %s1032_s28  }
 0x538   :  { %1028 = dma.done.wait [#allocation4], 512  }
 0x539   :  { %1029 = vsyncadd [#allocation4], 4294966784 }
 0x53a   :  { %729 = vsyncpa [#allocation3], 1 }
 0x53b   :  { %730 = vsyncpa [#allocation4], 1 }

// kernel: tpu_custom_call.1
= control target key start
LH: loop header
LB: loop body
LE: loop exit
PB: predicated region body
PF: predicated region fallthrough
CT: control target
= control target key end

     0   :  { %16 = vsyncpa [#allocation3], 0  ;;  %s1405_s0 = inlined_call_operand.vmem [shape: f32[32,4], index: 0, kind: input, shape index: {}]   ;;  %s1406_s1 = inlined_call_operand.vmem [shape: f32[32,32], index: 1, kind: input, shape index: {}]   ;;  %s1407_s2 = inlined_call_operand.vmem [shape: f32[36,64], index: 2, kind: input, shape index: {}]   ;;  %s1408_s3 = inlined_call_operand.vmem [shape: f32[36,32], index: 3, kind: input, shape index: {}]   ;;  %s1409_s4 = inlined_call_operand.vmem [shape: f32[1,64], index: 4, kind: input, shape index: {}]   ;;  %s1410_s5 = inlined_call_operand.vmem [shape: f32[1,32], index: 5, kind: input, shape index: {}]   ;;  %s1411_s6 = inlined_call_operand.hbm [shape: f32[32,32], index: 6, kind: input, shape index: {}]   ;;  %s1412_s7 = inlined_call_operand.vmem [shape: f32[64,64], index: 7, kind: input, shape index: {}]   ;;  %s1413_s8 = inlined_call_operand.vmem [shape: f32[64,32], index: 8, kind: input, shape index: {}]   ;;  %s1414_s9 = inlined_call_operand.vmem [shape: f32[1,64], index: 9, kind: input, shape index: {}]   ;;  %s1415_s10 = inlined_call_operand.vmem [shape: f32[1,32], index: 10, kind: input, shape index: {}]   ;;  %s1416_s11 = inlined_call_operand.hbm [shape: f32[32,64], index: 11, kind: output, shape index: {}]  }
   0x1   :  { %17 = vsyncpa [#allocation4], 0  ;;  %s1030_s17 = smov [#allocation2]   ;;  %s982_s21 = scalar_lea.hbm %s1411_s6, 512 }
   0x2   :  { %s35_s18 = sshll.u32 %s1030_s17, 4  ;;  %p983_p0 = scmp.ne.s32.totalorder %s1411_s6, %s982_s21  ;;  %s36_s18 = int_to_ptr.vmem [resolvable:$true] %s35_s18 }
   0x3   :  { %p986_p1 = scmp.lt.u32.totalorder %s982_s21, %s1411_s6 }
   0x5   :  { %p988_p2 = pnand %p986_p1, %p983_p0 }
   0x7   :  { %991 = shalt.err (!%p988_p2)
}
   0x8   :  { %s992_s26 = scalar_lea.vmem %s36_s18, 512  ;;  %p997_p4 = scmp.lt.s32.totalorder %s36_s18, %s36_s18 }
   0x9   :  { %p993_p3 = scmp.ne.s32.totalorder %s36_s18, %s992_s26  ;;  %p998_p5 = scmp.lt.s32.totalorder %s992_s26, %s992_s26 }
   0xb   :  { %p999_p6 = por %p998_p5, %p997_p4 }
   0xd   :  { %p1000_p7 = pnand %p999_p6, %p993_p3 }
   0xf   :  { %1003 = shalt.err (!%p1000_p7)
}
  0x10   :  { %s1031_s27 = smov 128   ;;  %s1032_s28 = smov 8  }
  0x11   :  { %41 = dma.hbm_to_vmem [thread:$0]  %s1411_s6, 512, %s36_s18, [#allocation3], %s1031_s27, %s1031_s27, %s1032_s28  }
  0x12   :  { %1026 = dma.done.wait [#allocation3], 512  }
  0x13   :  { %1027 = vsyncadd [#allocation3], 4294966784  ;;  %v1115_v0 = vld [vmem:[%s1406_s1] sm:$0xff]  ;;  %v1120_v1 = vld [vmem:[%s1406_s1 + $0x10] sm:$0xff]  ;;  %s1033_s19 = smov 4   ;;  %vm107_vm0 = vcmask 1043456  }
  0x14   :  { %v1125_v2 = vld [vmem:[%s1406_s1 + $0x8] sm:$0xff]  ;;  %65 = vrot.lane.b32.xlu0 %v1115_v0, %s1033_s19  ;;  %69 = vrot.lane.b32.xlu1 %v1120_v1, %s1033_s19  ;;  %v1132_v3 = vld [vmem:[%s1406_s1 + $0x18] sm:$0xff]  ;;  %s1034_s12 = smov 32   ;;  %vm77_vm1 = vcmask 31744   ;;  %vm94_vm2 = vcmask 293888   ;;  %vm408_vm3 = vcmask 261120  }
  0x15   :  { %v82_v4 = vld [vmem:[%s1407_s2] sm:$0xff]  ;;  %v83_v5 = vld [vmem:[%s1407_s2 + $0x8] sm:$0xff]  ;;  %v84_v6 = vld [vmem:[%s1407_s2 + $0x10] sm:$0xff]  ;;  %vm428_vm4 = vcmask 523264  }
  0x16   :  { %v85_v7 = vld [vmem:[%s1407_s2 + $0x18] sm:$0xff]  ;;  %v879_v8 = vpack.c.bf16 %v83_v5, %v82_v4  ;;  %v86_v10 = vld [vmem:[%s1407_s2 + $0x20] sm:$0xf]  ;;  %v1171_v15 = vld [vmem:[%s1405_s0 + $0x10] sm:$0xff] }
  0x17   :  { %v883_v9 = vpack.c.bf16 %v85_v7, %v84_v6  ;;  %v1164_v11 = vld [vmem:[%s1405_s0] sm:$0xff]  ;;  %v1177_v16 = vld [vmem:[%s1405_s0 + $0x8] sm:$0xff]  ;;  %v1184_v20 = vld [vmem:[%s1405_s0 + $0x18] sm:$0xff] }
  0x18   :  { %67 = vrot.lane.b32.xlu0 %v1125_v2, %s1033_s19  ;;  %71 = vrot.lane.b32.xlu1 %v1132_v3, %s1033_s19  ;;  %v256_v23 = vld [vmem:[%s1408_s3] sm:$0xff]  ;;  %v257_v24 = vld [vmem:[%s1408_s3 + $0x8] sm:$0xff]  ;;  %v1233_v5 = vld [vmem:[#allocation2 + $0x18] sm:$0xff] }
  0x19   :  { %880 = vmatprep.subr.bf16.mxu0 %v879_v8  ;;  %v258_v25 = vld [vmem:[%s1408_s3 + $0x10] sm:$0xff]  ;;  %v887_v26 = vpack.c.bf16 %v257_v24, %v256_v23  ;;  %v259_v27 = vld [vmem:[%s1408_s3 + $0x18] sm:$0xff]  ;;  %v731_v29 = vld [vmem:[%s1409_s4] ss:$0 sm:$0xff] }
  0x1a   :  { %882 = vmatpush3.bf16.msra.mxu0 %v879_v8  ;;  %v891_v28 = vpack.c.bf16 %v259_v27, %v258_v25  ;;  %v260_v46 = vld [vmem:[%s1408_s3 + $0x20] sm:$0xf]  ;;  %s1035_s3 = smov 100   ;;  %v1225_v63 = vld [vmem:[#allocation2 + $0x8] sm:$0xff]  ;;  %v1235_v6 = vld [vmem:[#allocation2 + $0x10] sm:$0xff] }
  0x1b   :  { %884 = vmatprep.subr.bf16.mxu0 %v883_v9  ;;  %888 = vmatprep.subr.bf16.mxu1 %v887_v26  ;;  %v1227_v4 = vld [vmem:[#allocation2] sm:$0xff]  ;;  %v419_v23 = vld [vmem:[%s1412_s7 + $0x30] sm:$0xff]  ;;  %v420_v25 = vld [vmem:[%s1412_s7 + $0x38] sm:$0xff] }
  0x1c   :  { %222 = vrot.lane.b32.xlu1 %v1125_v2, %s1034_s12  ;;  %220 = vrot.lane.b32.xlu0 %v1115_v0, %s1034_s12  ;;  %v741_v27 = vld [vmem:[%s1410_s5] ss:$0 sm:$0xff] }
  0x1d   :  { %890 = vmatpush3.bf16.msra.mxu1 %v887_v26  ;;  %v907_v26 = vpack.c.bf16 %v420_v25, %v419_v23 }
  0x1e   :  { %886 = vmatpush3.bf16.msra.mxu0 %v883_v9  ;;  %892 = vmatprep.subr.bf16.mxu1 %v891_v28 }
  0x1f   :  { %811 = vmatprep.subr.msk.mxu0 %vm107_vm0, %v86_v10 }
  0x20   :  { %226 = vrot.lane.b32.xlu1 %v1132_v3, %s1034_s12  ;;  %224 = vrot.lane.b32.xlu0 %v1120_v1, %s1034_s12 }
  0x21   :  { %894 = vmatpush3.bf16.msra.mxu1 %v891_v28 }
  0x22   :  { %812 = vmatpush3.msk.msra.mxu0 %vm107_vm0, %v86_v10  ;;  %827 = vmatprep.subr.msk.mxu1 %vm107_vm0, %v260_v46 }
  0x25   :  { %828 = vmatpush3.msk.msra.mxu1 %vm107_vm0, %v260_v46 }
  0x86   :  { %v66_v12 = vpop.permute.xlu0 %65  ;;  %v70_v13 = vpop.permute.xlu1 %69 }
  0x87   :  { %v78_v14 = vsel %vm77_vm1, %v1164_v11, %v66_v12  ;;  %v80_v17 = vsel %vm77_vm1, %v1171_v15, %v70_v13 }
  0x88   :  { %813 = vmatprep.mubr.msk.f32.mxu0 %vm94_vm2, %v78_v14 }
  0x8a   :  { %v68_v18 = vpop.permute.xlu0 %67  ;;  %v72_v19 = vpop.permute.xlu1 %71 }
  0x8b   :  { %v79_v21 = vsel %vm77_vm1, %v1177_v16, %v68_v18  ;;  %v81_v22 = vsel %vm77_vm1, %v1184_v20, %v72_v19  ;;  %v416_v19 = vld [vmem:[%s1412_s7 + $0x18] sm:$0xff] }
  0x8c   :  { %814 = vmatmul.mubr.msk.f32.vlgmr.msra.gmra.mrb[0].mxu0 %vm94_vm2, %v79_v21  ;;  %v417_v21 = vld [vmem:[%s1412_s7 + $0x20] sm:$0xff] }
  0x8d   :  { %816 = vmatprep.mubr.msk.f32.mxu0 %vm94_vm2, %v80_v17 }
  0x8e   :  { %v223_v51 = vpop.permute.xlu1 %222  ;;  %v221_v52 = vpop.permute.xlu0 %220 }
  0x90   :  { %817 = vmatmul.mubr.msk.f32.gmra.mrb[2].mxu0 %vm94_vm2, %v81_v22  ;;  %v418_v22 = vld [vmem:[%s1412_s7 + $0x28] sm:$0xff] }
  0x91   :  { %v903_v24 = vpack.c.bf16 %v418_v22, %v417_v21 }
  0x92   :  { %v227_v57 = vpop.permute.xlu1 %226  ;;  %v225_v58 = vpop.permute.xlu0 %224 }
 0x15f   :  { %v815_v30 = vpop.f32.mrb[0].mxu0 }
 0x160   :  { %v183_v31 = vadd.f32 %v815_v30, %v731_v29  ;;  %v177_v32 = vpop.f32.mrb[1].mxu0 }
 0x161   :  { %v178_v33 = vadd.f32 %v731_v29, %v177_v32 }
 0x162   :  { %v738_v34 = vmul.f32 -1.442695, %v183_v31 }
 0x163   :  { %v737_v35 = vmul.f32 -1.442695, %v178_v33  ;;  %v818_v36 = vpop.f32.mrb[2].mxu0 }
 0x164   :  { %934 = vpow2.f32 %v738_v34  ;;  %v193_v37 = vadd.f32 %v818_v36, %v731_v29  ;;  %v187_v38 = vpop.f32.mrb[3].mxu0 }
 0x165   :  { %936 = vpow2.f32 %v737_v35  ;;  %v188_v39 = vadd.f32 %v731_v29, %v187_v38 }
 0x166   :  { %v740_v40 = vmul.f32 -1.442695, %v193_v37 }
 0x167   :  { %v739_v41 = vmul.f32 -1.442695, %v188_v39 }
 0x168   :  { %938 = vpow2.f32 %v740_v40 }
 0x169   :  { %940 = vpow2.f32 %v739_v41 }
 0x16e   :  { %v935_v42 = vpop.eup %934 }
 0x16f   :  { %v937_v43 = vpop.eup %936  ;;  %v209_v44 = vadd.f32 1.0, %v935_v42 }
 0x170   :  { %v208_v45 = vadd.f32 1.0, %v937_v43 }
 0x171   :  { %942 = vrcp.f32 %v209_v44 }
 0x172   :  { %v939_v47 = vpop.eup %938  ;;  %944 = vrcp.f32 %v208_v45 }
 0x173   :  { %v941_v48 = vpop.eup %940  ;;  %v211_v49 = vadd.f32 1.0, %v939_v47 }
 0x174   :  { %v210_v50 = vadd.f32 1.0, %v941_v48 }
 0x175   :  { %946 = vrcp.f32 %v211_v49 }
 0x176   :  { %948 = vrcp.f32 %v210_v50 }
 0x17b   :  { %v1213_v53 = vpop.eup %942 }
 0x17c   :  { %v1215_v54 = vpop.eup %944  ;;  %v233_v55 = vmul.f32 %v1213_v53, %v223_v51  ;;  %v373_v36 = vsub.f32 1.0, %v1213_v53 }
 0x17d   :  { %v232_v56 = vmul.f32 %v1215_v54, %v221_v52  ;;  %v372_v37 = vsub.f32 1.0, %v1215_v54 }
 0x17e   :  { %242 = vrot.lane.b32.xlu1 %v233_v55, %s1035_s3  ;;  %v377_v40 = vmul.f32 %v373_v36, %v1125_v2 }
 0x17f   :  { %v1219_v59 = vpop.eup %946  ;;  %240 = vrot.lane.b32.xlu0 %v232_v56, %s1035_s3  ;;  %v376_v45 = vmul.f32 %v372_v37, %v1115_v0 }
 0x180   :  { %v1221_v60 = vpop.eup %948  ;;  %v235_v61 = vmul.f32 %v1219_v59, %v227_v57  ;;  %v375_v43 = vsub.f32 1.0, %v1219_v59 }
 0x181   :  { %v234_v62 = vmul.f32 %v1221_v60, %v225_v58  ;;  %v374_v47 = vsub.f32 1.0, %v1221_v60 }
 0x182   :  { %246 = vrot.lane.b32.xlu1 %v235_v61, %s1035_s3  ;;  %v379_v51 = vmul.f32 %v375_v43, %v1132_v3  ;;  %v559_v61 = vld [vmem:[%s1413_s8 + $0x8] sm:$0xff] }
 0x183   :  { %244 = vrot.lane.b32.xlu0 %v234_v62, %s1035_s3 }
 0x186   :  { %398 = vrot.lane.b32.xlu1 %v1225_v63, %s1034_s12 }
 0x187   :  { %396 = vrot.lane.b32.xlu0 %v1227_v4, %s1034_s12 }
 0x18a   :  { %402 = vrot.lane.b32.xlu1 %v1233_v5, %s1034_s12 }
 0x18b   :  { %400 = vrot.lane.b32.xlu0 %v1235_v6, %s1034_s12 }
 0x1f0   :  { %v243_v7 = vpop.permute.xlu1 %242 }
 0x1f1   :  { %v241_v8 = vpop.permute.xlu0 %240  ;;  %v253_v10 = vsel %vm77_vm1, %v1177_v16, %v243_v7  ;;  %v414_v16 = vld [vmem:[%s1412_s7 + $0x8] sm:$0xff]  ;;  %v560_v7 = vld [vmem:[%s1413_s8 + $0x10] sm:$0xff] }
 0x1f2   :  { %v252_v9 = vsel %vm77_vm1, %v1164_v11, %v241_v8  ;;  %v413_v11 = vld [vmem:[%s1412_s7] sm:$0xff]  ;;  %v561_v8 = vld [vmem:[%s1413_s8 + $0x18] sm:$0xff] }
 0x1f3   :  { %829 = vmatprep.mubr.msk.f32.mxu1 %vm94_vm2, %v252_v9  ;;  %v895_v18 = vpack.c.bf16 %v414_v16, %v413_v11  ;;  %v915_v9 = vpack.c.bf16 %v561_v8, %v560_v7  ;;  %v747_v16 = vld [vmem:[%s1414_s9] ss:$0 sm:$0xff] }
 0x1f4   :  { %v247_v12 = vpop.permute.xlu1 %246  ;;  %830 = vmatmul.mubr.msk.f32.vlgmr.msra.gmra.mrb[0].mxu1 %vm94_vm2, %v253_v10  ;;  %v562_v10 = vld [vmem:[%s1413_s8 + $0x20] sm:$0xff] }
 0x1f5   :  { %v245_v13 = vpop.permute.xlu0 %244  ;;  %v255_v17 = vsel %vm77_vm1, %v1184_v20, %v247_v12  ;;  %896 = vmatprep.subr.bf16.mxu0 %v895_v18  ;;  %v563_v12 = vld [vmem:[%s1413_s8 + $0x28] sm:$0xff] }
 0x1f6   :  { %v254_v14 = vsel %vm77_vm1, %v1171_v15, %v245_v13  ;;  %898 = vmatpush3.bf16.msra.mxu0 %v895_v18  ;;  %v415_v15 = vld [vmem:[%s1412_s7 + $0x10] sm:$0xff] }
 0x1f7   :  { %832 = vmatprep.mubr.msk.f32.mxu1 %vm94_vm2, %v254_v14  ;;  %v899_v20 = vpack.c.bf16 %v416_v19, %v415_v15  ;;  %v564_v13 = vld [vmem:[%s1413_s8 + $0x30] sm:$0xff]  ;;  %v919_v14 = vpack.c.bf16 %v563_v12, %v562_v10 }
 0x1f8   :  { %833 = vmatmul.mubr.msk.f32.gmra.mrb[2].mxu1 %vm94_vm2, %v255_v17  ;;  %v1287_v44 = vpop.permute.xlu1 %398  ;;  %v565_v17 = vld [vmem:[%s1413_s8 + $0x38] sm:$0xff] }
 0x1f9   :  { %900 = vmatprep.subr.bf16.mxu0 %v899_v20  ;;  %v1284_v42 = vpop.permute.xlu0 %396  ;;  %v923_v11 = vpack.c.bf16 %v565_v17, %v564_v13 }
 0x1fa   :  { %902 = vmatpush3.bf16.msra.mxu0 %v899_v20 }
 0x1fb   :  { %904 = vmatprep.subr.bf16.mxu0 %v903_v24 }
 0x1fc   :  { %v1311_v3 = vpop.permute.xlu1 %402 }
 0x1fd   :  { %v1309_v57 = vpop.permute.xlu0 %400 }
 0x1fe   :  { %906 = vmatpush3.bf16.msra.mxu0 %v903_v24 }
 0x1ff   :  { %908 = vmatprep.subr.bf16.mxu0 %v907_v26 }
 0x202   :  { %910 = vmatpush3.bf16.msra.mxu0 %v907_v26 }
 0x2c7   :  { %v831_v28 = vpop.f32.mrb[0].mxu1 }
 0x2c8   :  { %v355_v29 = vadd.f32 %v831_v28, %v741_v27  ;;  %v349_v30 = vpop.f32.mrb[1].mxu1 }
 0x2c9   :  { %v350_v31 = vadd.f32 %v741_v27, %v349_v30 }
 0x2ca   :  { %950 = vtanh.f32 %v355_v29 }
 0x2cb   :  { %952 = vtanh.f32 %v350_v31  ;;  %v834_v32 = vpop.f32.mrb[2].mxu1 }
 0x2cc   :  { %v365_v33 = vadd.f32 %v834_v32, %v741_v27  ;;  %v359_v34 = vpop.f32.mrb[3].mxu1 }
 0x2cd   :  { %v360_v35 = vadd.f32 %v741_v27, %v359_v34 }
 0x2ce   :  { %954 = vtanh.f32 %v365_v33 }
 0x2cf   :  { %956 = vtanh.f32 %v360_v35 }
 0x2d4   :  { %v951_v38 = vpop.eup %950 }
 0x2d5   :  { %v953_v39 = vpop.eup %952  ;;  %v381_v41 = vmul.f32 %v951_v38, %v1213_v53  ;;  %v378_v53 = vmul.f32 %v374_v47, %v1120_v1 }
 0x2d6   :  { %v380_v46 = vmul.f32 %v953_v39, %v1215_v54 }
 0x2d7   :  { %v1292_v48 = vadd.f32 %v381_v41, %v377_v40 }
 0x2d8   :  { %v955_v49 = vpop.eup %954  ;;  %v1294_v50 = vadd.f32 %v380_v46, %v376_v45 }
 0x2d9   :  { %v957_v2 = vpop.eup %956  ;;  %v383_v52 = vmul.f32 %v955_v49, %v1219_v59  ;;  %v410_v55 = vsel %vm408_vm3, %v1292_v48, %v1287_v44 }
 0x2da   :  { %v409_v0 = vsel %vm408_vm3, %v1294_v50, %v1284_v42  ;;  %v382_v54 = vmul.f32 %v957_v2, %v1221_v60  ;;  %v558_v60 = vld [vmem:[%s1413_s8] sm:$0xff] }
 0x2db   :  { %851 = vmatprep.mubr.msk.f32.mxu0 %vm428_vm4, %v409_v0  ;;  %v1307_v56 = vadd.f32 %v383_v52, %v379_v51  ;;  %v911_v62 = vpack.c.bf16 %v559_v61, %v558_v60  ;;  %v756_v2 = vld [vmem:[%s1415_s10] ss:$0 sm:$0xff]  ;;  %s1036_s10 = smov [#allocation5]  }
 0x2dc   :  { %852 = vmatmul.mubr.msk.f32.vlgmr.msra.gmra.mrb[4].mxu0 %vm428_vm4, %v410_v55  ;;  %v1314_v58 = vadd.f32 %v382_v54, %v378_v53  ;;  %s719_s22 = sshll.u32 %s1036_s10, 4  ;;  %s720_s22 = int_to_ptr.vmem [resolvable:$true] %s719_s22 }
 0x2dd   :  { %v412_v59 = vsel %vm408_vm3, %v1307_v56, %v1311_v3  ;;  %912 = vmatprep.subr.bf16.mxu1 %v911_v62  ;;  %p1009_p9 = scmp.lt.s32.totalorder %s720_s22, %s720_s22 }
 0x2de   :  { %v411_v1 = vsel %vm408_vm3, %v1314_v58, %v1309_v57  ;;  %914 = vmatpush3.bf16.msra.mxu1 %v911_v62 }
 0x2df   :  { %854 = vmatprep.mubr.msk.f32.mxu0 %vm428_vm4, %v411_v1  ;;  %916 = vmatprep.subr.bf16.mxu1 %v915_v9 }
 0x2e0   :  { %855 = vmatmul.mubr.msk.f32.gmra.mrb[6].mxu0 %vm428_vm4, %v412_v59 }
 0x2e2   :  { %918 = vmatpush3.bf16.msra.mxu1 %v915_v9 }
 0x2e3   :  { %920 = vmatprep.subr.bf16.mxu1 %v919_v14 }
 0x2e6   :  { %922 = vmatpush3.bf16.msra.mxu1 %v919_v14 }
 0x2e7   :  { %924 = vmatprep.subr.bf16.mxu1 %v923_v11 }
 0x2ea   :  { %926 = vmatpush3.bf16.msra.mxu1 %v923_v11 }
 0x3af   :  { %v853_v18 = vpop.f32.mrb[4].mxu0 }
 0x3b0   :  { %v513_v15 = vadd.f32 %v853_v18, %v747_v16  ;;  %v507_v19 = vpop.f32.mrb[5].mxu0 }
 0x3b1   :  { %v508_v20 = vadd.f32 %v747_v16, %v507_v19 }
 0x3b2   :  { %v753_v21 = vmul.f32 -1.442695, %v513_v15 }
 0x3b3   :  { %v752_v22 = vmul.f32 -1.442695, %v508_v20  ;;  %v856_v23 = vpop.f32.mrb[6].mxu0 }
 0x3b4   :  { %958 = vpow2.f32 %v753_v21  ;;  %v523_v24 = vadd.f32 %v856_v23, %v747_v16  ;;  %v517_v25 = vpop.f32.mrb[7].mxu0 }
 0x3b5   :  { %960 = vpow2.f32 %v752_v22  ;;  %v518_v26 = vadd.f32 %v747_v16, %v517_v25 }
 0x3b6   :  { %v755_v27 = vmul.f32 -1.442695, %v523_v24 }
 0x3b7   :  { %v754_v28 = vmul.f32 -1.442695, %v518_v26 }
 0x3b8   :  { %962 = vpow2.f32 %v755_v27 }
 0x3b9   :  { %964 = vpow2.f32 %v754_v28 }
 0x3be   :  { %v959_v29 = vpop.eup %958 }
 0x3bf   :  { %v961_v30 = vpop.eup %960  ;;  %v539_v31 = vadd.f32 1.0, %v959_v29 }
 0x3c0   :  { %v538_v32 = vadd.f32 1.0, %v961_v30 }
 0x3c1   :  { %966 = vrcp.f32 %v539_v31 }
 0x3c2   :  { %v963_v33 = vpop.eup %962  ;;  %968 = vrcp.f32 %v538_v32 }
 0x3c3   :  { %v965_v34 = vpop.eup %964  ;;  %v541_v35 = vadd.f32 1.0, %v963_v33 }
 0x3c4   :  { %v540_v36 = vadd.f32 1.0, %v965_v34 }
 0x3c5   :  { %970 = vrcp.f32 %v541_v35 }
 0x3c6   :  { %972 = vrcp.f32 %v540_v36 }
 0x3cb   :  { %v967_v37 = vpop.eup %966 }
 0x3cc   :  { %v969_v38 = vpop.eup %968  ;;  %v551_v39 = vmul.f32 %v967_v37, %v1287_v44  ;;  %v675_v1 = vsub.f32 1.0, %v967_v37 }
 0x3cd   :  { %v550_v40 = vmul.f32 %v969_v38, %v1284_v42  ;;  %v674_v59 = vsub.f32 1.0, %v969_v38 }
 0x3ce   :  { %v555_v46 = vsel %vm408_vm3, %v1292_v48, %v551_v39  ;;  %v679_v62 = vmul.f32 %v675_v1, %v1225_v63 }
 0x3cf   :  { %v971_v41 = vpop.eup %970  ;;  %v554_v43 = vsel %vm408_vm3, %v1294_v50, %v550_v40  ;;  %v678_v9 = vmul.f32 %v674_v59, %v1227_v4 }
 0x3d0   :  { %v973_v45 = vpop.eup %972  ;;  %873 = vmatprep.mubr.msk.f32.mxu1 %vm428_vm4, %v554_v43  ;;  %v553_v47 = vmul.f32 %v971_v41, %v1311_v3  ;;  %v677_v8 = vsub.f32 1.0, %v971_v41 }
 0x3d1   :  { %874 = vmatmul.mubr.msk.f32.vlgmr.msra.gmra.mrb[4].mxu1 %vm428_vm4, %v555_v46  ;;  %v552_v49 = vmul.f32 %v973_v45, %v1309_v57  ;;  %v676_v12 = vsub.f32 1.0, %v973_v45 }
 0x3d2   :  { %v557_v42 = vsel %vm408_vm3, %v1307_v56, %v553_v47  ;;  %v681_v16 = vmul.f32 %v677_v8, %v1233_v5 }
 0x3d3   :  { %v556_v44 = vsel %vm408_vm3, %v1314_v58, %v552_v49  ;;  %v680_v15 = vmul.f32 %v676_v12, %v1235_v6 }
 0x3d4   :  { %876 = vmatprep.mubr.msk.f32.mxu1 %vm428_vm4, %v556_v44 }
 0x3d5   :  { %877 = vmatmul.mubr.msk.f32.gmra.mrb[6].mxu1 %vm428_vm4, %v557_v42 }
 0x4a4   :  { %v875_v51 = vpop.f32.mrb[4].mxu1 }
 0x4a5   :  { %v657_v52 = vadd.f32 %v875_v51, %v756_v2  ;;  %v651_v0 = vpop.f32.mrb[5].mxu1 }
 0x4a6   :  { %v652_v53 = vadd.f32 %v756_v2, %v651_v0 }
 0x4a7   :  { %974 = vtanh.f32 %v657_v52 }
 0x4a8   :  { %976 = vtanh.f32 %v652_v53  ;;  %v878_v54 = vpop.f32.mrb[6].mxu1 }
 0x4a9   :  { %v667_v55 = vadd.f32 %v878_v54, %v756_v2  ;;  %v661_v57 = vpop.f32.mrb[7].mxu1 }
 0x4aa   :  { %v662_v3 = vadd.f32 %v756_v2, %v661_v57 }
 0x4ab   :  { %978 = vtanh.f32 %v667_v55 }
 0x4ac   :  { %980 = vtanh.f32 %v662_v3 }
 0x4b1   :  { %v975_v60 = vpop.eup %974 }
 0x4b2   :  { %v977_v61 = vpop.eup %976  ;;  %v683_v7 = vmul.f32 %v975_v60, %v967_v37 }
 0x4b3   :  { %v682_v10 = vmul.f32 %v977_v61, %v969_v38 }
 0x4b4   :  { %v687_v13 = vadd.f32 %v683_v7, %v679_v62 }
 0x4b5   :  { %v979_v14 = vpop.eup %978  ;;  %v686_v17 = vadd.f32 %v682_v10, %v678_v9 }
 0x4b6   :  { %v981_v11 = vpop.eup %980  ;;  %696 = vrot.lane.b32.xlu1 %v687_v13, %s1034_s12  ;;  %v685_v18 = vmul.f32 %v979_v14, %v971_v41 }
 0x4b7   :  { %694 = vrot.lane.b32.xlu0 %v686_v17, %s1034_s12  ;;  %v684_v63 = vmul.f32 %v981_v11, %v973_v45 }
 0x4b8   :  { %v689_v19 = vadd.f32 %v685_v18, %v681_v16 }
 0x4b9   :  { %v688_v20 = vadd.f32 %v684_v63, %v680_v15 }
 0x4ba   :  { %700 = vrot.lane.b32.xlu1 %v689_v19, %s1034_s12 }
 0x4bb   :  { %698 = vrot.lane.b32.xlu0 %v688_v20, %s1034_s12  ;;  %s1004_s12 = scalar_lea.vmem %s720_s22, 512 }
 0x4bc   :  { %p1005_p8 = scmp.ne.s32.totalorder %s720_s22, %s1004_s12  ;;  %p1010_p10 = scmp.lt.s32.totalorder %s1004_s12, %s1004_s12 }
 0x4be   :  { %p1011_p11 = por %p1010_p10, %p1009_p9 }
 0x4c0   :  { %p1012_p12 = pnand %p1011_p11, %p1005_p8 }
 0x528   :  { %v697_v4 = vpop.permute.xlu1 %696 }
 0x529   :  { %v707_v21 = vsel %vm408_vm3, %v1292_v48, %v697_v4  ;;  %v695_v22 = vpop.permute.xlu0 %694 }
 0x52a   :  { %711 = vst.msk [vmem:[#allocation5 + $0x8] sm:$0xff] %vm428_vm4, %v707_v21  ;;  %v706_v5 = vsel %vm408_vm3, %v1294_v50, %v695_v22 }
 0x52b   :  { %710 = vst.msk [vmem:[#allocation5] sm:$0xff] %vm428_vm4, %v706_v5 }
 0x52c   :  { %v701_v6 = vpop.permute.xlu1 %700 }
 0x52d   :  { %v709_v23 = vsel %vm408_vm3, %v1307_v56, %v701_v6  ;;  %v699_v24 = vpop.permute.xlu0 %698 }
 0x52e   :  { %713 = vst.msk [vmem:[#allocation5 + $0x18] sm:$0xff] %vm428_vm4, %v709_v23  ;;  %v708_v48 = vsel %vm408_vm3, %v1314_v58, %v699_v24 }
 0x52f   :  { %712 = vst.msk [vmem:[#allocation5 + $0x10] sm:$0xff] %vm428_vm4, %v708_v48 }
 0x530   :  { %1015 = shalt.err (!%p1012_p12)
}
 0x531   :  { %s1016_s24 = scalar_lea.hbm %s1416_s11, 512 }
 0x532   :  { %p1017_p13 = scmp.ne.s32.totalorder %s1416_s11, %s1016_s24  ;;  %p1020_p0 = scmp.lt.u32.totalorder %s1016_s24, %s1416_s11 }
 0x534   :  { %p1022_p1 = pnand %p1020_p0, %p1017_p13 }
 0x536   :  { %1025 = shalt.err (!%p1022_p1)
}
 0x537   :  { %725 = dma.vmem_to_hbm [thread:$0]  %s720_s22, 512, %s1416_s11, [#allocation4], %s1031_s27, %s1031_s27, %s1032_s28  }
 0x538   :  { %1028 = dma.done.wait [#allocation4], 512  }
 0x539   :  { %1029 = vsyncadd [#allocation4], 4294966784 }
 0x53a   :  { %729 = vsyncpa [#allocation3], 1 }
 0x53b   :  { %730 = vsyncpa [#allocation4], 1 }

</bundles_post_ra>
